<compile_context>
chip_gen: v7x
topology: tpu7x:2x2x1
jax: 0.10.0
libtpu: 0.0.40
codegen_flags: <defaults>
</compile_context>

<pallas_src>
import functools

import jax
import jax.numpy as jnp
from jax.experimental import pallas as pl
from jax.experimental.pallas import tpu as pltpu


def _round_up(x, m):
    return (x + m - 1) // m * m


# ----------------------------------------------------------------------------
# Pallas kernel: K-tiled input projection + LSTM recurrence + Linear head
# ----------------------------------------------------------------------------
def _lstm_fused_kernel(x_ref, w_ih_ref, w_hh_ref, b_ref, w_fc_ref, b_fc_ref,
                       out_ref, gx_scr, *, seq_len, hidden_pad, unroll):
    """Grid: (num_k_tiles,) over the padded input-feature axis.

    Shapes (zero-padded):
      x_ref:    (Sp, tk)     bf16  time-major input K-slice (batch=1 folded)
      w_ih_ref: (tk, 4*Hp)   bf16  gate-blocked (i,f,o,g) input->gate slice
      w_hh_ref: (Hp, 4*Hp)   f32   gate-blocked hidden->gate weights
      b_ref:    (1, 4*Hp)    f32   b_ih + b_hh, gate-blocked
      w_fc_ref: (Hp, Op)     f32   Linear head weight
      b_fc_ref: (1, Op)      f32   Linear head bias
      out_ref:  (8, Op)      f32   prediction of the LAST timestep
      gx_scr:   (Sp, 4*Hp)   f32   accumulated whole-sequence projection
    """
    Hp = hidden_pad
    k = pl.program_id(0)

    # Initialize the projection accumulator with the (folded) bias once.
    @pl.when(k == 0)
    def _():
        gx_scr[...] = jnp.broadcast_to(b_ref[...], gx_scr.shape)

    # Streamed, HBM-bound partial projection for ALL timesteps of this K tile.
    gx_scr[...] += jnp.dot(x_ref[...], w_ih_ref[...],
                           preferred_element_type=jnp.float32)

    # After the last K tile: serial recurrence + fused Linear head.
    @pl.when(k == pl.num_programs(0) - 1)
    def _():
        def step(t, carry):
            h, c = carry                                       # (8, Hp) each
            # (1, 4*Hp) projection row broadcast against the (8, 4*Hp) h-term.
            gates = gx_scr[pl.ds(t, 1), :] + jnp.dot(
                h, w_hh_ref[...], preferred_element_type=jnp.float32)
            # Gate order is (i, f, o, g): one contiguous sigmoid slab + tanh.
            sig = jax.nn.sigmoid(gates[:, 0:3 * Hp])
            i_g = sig[:, 0 * Hp:1 * Hp]
            f_g = sig[:, 1 * Hp:2 * Hp]
            o_g = sig[:, 2 * Hp:3 * Hp]
            g_g = jnp.tanh(gates[:, 3 * Hp:4 * Hp])
            c_new = f_g * c + i_g * g_g
            h_new = o_g * jnp.tanh(c_new)
            return (h_new, c_new)

        h0 = jnp.zeros((8, Hp), jnp.float32)
        c0 = jnp.zeros((8, Hp), jnp.float32)
        h_last, _ = jax.lax.fori_loop(0, seq_len, step, (h0, c0),
                                      unroll=unroll)

        # Fused Linear head; rows of h_last are identical so the (8, Op) store
        # is already the broadcast prediction -> lane/sublane-dense store.
        out_ref[...] = (jnp.dot(h_last, w_fc_ref[...],
                                preferred_element_type=jnp.float32)
                        + b_fc_ref[...])


# ----------------------------------------------------------------------------
# One-time parameter preparation (transpose + gate-reorder + pad + bf16 cast)
# ----------------------------------------------------------------------------
def prepare_params(params, input_size, hidden_size, output_size, tk_max=4096):
    w_ih, w_hh, b_ih, b_hh = params["lstm"]
    w_fc, b_fc = params["fc"]
    I, H, O = input_size, hidden_size, output_size
    Hp = _round_up(H, 128)
    Op = _round_up(O, 128)
    # K tile: multiple of 128 lanes; sized so 2x(tk,4*Hp) bf16 buffers fit
    # comfortably inside even v7x's 64 MiB VMEM / v5e's small scoped budget.
    tk = min(_round_up(tk_max, 128), _round_up(I, 128))
    Ip = _round_up(I, tk)

    # PyTorch gate order is (i, f, g, o); repack to (i, f, o, g).
    perm = jnp.array([0, 1, 3, 2], dtype=jnp.int32)

    def gate_block_pad(w_t, rows, rows_p, dtype):
        w4 = w_t.reshape(rows, 4, H)[:, perm, :]
        out = jnp.zeros((rows_p, 4, Hp), jnp.float32).at[:rows, :, :H].set(w4)
        return out.reshape(rows_p, 4 * Hp).astype(dtype)

    w_ih_p = gate_block_pad(w_ih.T, I, Ip, jnp.bfloat16)     # (Ip, 4*Hp) bf16
    w_hh_p = gate_block_pad(w_hh.T, H, Hp, jnp.float32)      # (Hp, 4*Hp) f32
    b4 = (b_ih + b_hh).reshape(4, H)[perm, :]
    b_p = (jnp.zeros((1, 4, Hp), jnp.float32)
           .at[0, :, :H].set(b4).reshape(1, 4 * Hp))         # (1, 4*Hp)
    w_fc_p = jnp.zeros((Hp, Op), jnp.float32).at[:H, :O].set(w_fc.T)
    b_fc_p = jnp.zeros((1, Op), jnp.float32).at[0, :O].set(b_fc)
    return {"w_ih": w_ih_p, "w_hh": w_hh_p, "b": b_p,
            "w_fc": w_fc_p, "b_fc": b_fc_p,
            "dims": (I, H, O, Ip, Hp, Op, tk)}


def _vmem_bytes(Sp, tk, Hp, Op):
    four_hp = 4 * Hp
    total = 0
    total += 2 * tk * four_hp * 2          # W_ih tile, bf16, double-buffered
    total += 2 * Sp * tk * 2               # x tile, bf16, double-buffered
    total += 2 * Hp * four_hp * 4          # W_hh (f32)
    total += 2 * 8 * four_hp * 4           # bias (sublane-padded)
    total += 2 * Hp * Op * 4               # FC weight
    total += 2 * 8 * Op * 4                # FC bias (sublane-padded)
    total += 2 * 8 * Op * 4                # output block
    total += Sp * four_hp * 4              # projection scratch
    return total


# ----------------------------------------------------------------------------
# Forward wrapper
# ----------------------------------------------------------------------------
def lstm_forward(x_seq, prepped):
    """x_seq: (S, input_size) f32 (module views input as (S, 1, I), batch=1).
    Returns predictions[-1], shape (output_size,)."""
    I, H, O, Ip, Hp, Op, tk = prepped["dims"]
    S = x_seq.shape[0]
    Sp = max(_round_up(S, 8), 8)
    x_p = (jnp.zeros((Sp, Ip), jnp.float32).at[:S, :I].set(x_seq)
           .astype(jnp.bfloat16))
    nk = Ip // tk
    unroll = True if S <= 16 else 8

    kernel = functools.partial(_lstm_fused_kernel, seq_len=S, hidden_pad=Hp,
                               unroll=unroll)
    vmem_limit = min(_vmem_bytes(Sp, tk, Hp, Op) + (4 << 20), 48 << 20)

    out = pl.pallas_call(
        kernel,
        out_shape=jax.ShapeDtypeStruct((8, Op), jnp.float32),
        grid_spec=pltpu.PrefetchScalarGridSpec(
            num_scalar_prefetch=0,
            grid=(nk,),
            in_specs=[
                pl.BlockSpec((Sp, tk), lambda k: (0, k)),        # x
                pl.BlockSpec((tk, 4 * Hp), lambda k: (k, 0)),    # W_ih
                pl.BlockSpec((Hp, 4 * Hp), lambda k: (0, 0)),    # W_hh
                pl.BlockSpec((1, 4 * Hp), lambda k: (0, 0)),     # bias
                pl.BlockSpec((Hp, Op), lambda k: (0, 0)),        # W_fc
                pl.BlockSpec((1, Op), lambda k: (0, 0)),         # b_fc
            ],
            out_specs=pl.BlockSpec((8, Op), lambda k: (0, 0)),
            scratch_shapes=[pltpu.VMEM((Sp, 4 * Hp), jnp.float32)],
        ),
        compiler_params=pltpu.CompilerParams(
            dimension_semantics=("arbitrary",),
            vmem_limit_bytes=int(vmem_limit)),
    )(x_p, prepped["w_ih"], prepped["w_hh"], prepped["b"],
      prepped["w_fc"], prepped["b_fc"])
    return out[0, :O]


# ----------------------------------------------------------------------------
# Deterministic parameter init (PyTorch-style uniform(-1/sqrt(H), 1/sqrt(H)))
# ----------------------------------------------------------------------------
def init_params(key, input_size, hidden_size, output_size):
    bound = 1.0 / float(hidden_size) ** 0.5
    k1, k2, k3, k4, k5, k6 = jax.random.split(key, 6)
    w_ih = jax.random.uniform(k1, (4 * hidden_size, input_size),
                              jnp.float32, -bound, bound)
    w_hh = jax.random.uniform(k2, (4 * hidden_size, hidden_size),
                              jnp.float32, -bound, bound)
    b_ih = jax.random.uniform(k3, (4 * hidden_size,), jnp.float32, -bound, bound)
    b_hh = jax.random.uniform(k4, (4 * hidden_size,), jnp.float32, -bound, bound)
    w_fc = jax.random.uniform(k5, (output_size, hidden_size),
                              jnp.float32, -bound, bound)
    b_fc = jax.random.uniform(k6, (output_size,), jnp.float32, -bound, bound)
    return {"lstm": (w_ih, w_hh, b_ih, b_hh), "fc": (w_fc, b_fc)}


# ----------------------------------------------------------------------------
# Pure-JAX reference (mirrors nn.LSTM + nn.Linear, returns predictions[-1]).
# The streamed projection operands are cast to bf16 exactly like the kernel's
# weight/input storage; everything else is f32, matching the kernel.
# ----------------------------------------------------------------------------
def reference_forward(x_seq, params):
    w_ih, w_hh, b_ih, b_hh = params["lstm"]
    w_fc, b_fc = params["fc"]
    H = w_hh.shape[1]

    x_q = x_seq.astype(jnp.bfloat16).astype(jnp.float32)
    w_ih_q = w_ih.astype(jnp.bfloat16).astype(jnp.float32)
    gx = x_q @ w_ih_q.T + b_ih + b_hh                       # (S, 4H)

    def step(carry, gx_t):
        h, c = carry
        gates = gx_t + h @ w_hh.T
        i_g = jax.nn.sigmoid(gates[0 * H:1 * H])
        f_g = jax.nn.sigmoid(gates[1 * H:2 * H])
        g_g = jnp.tanh(gates[2 * H:3 * H])
        o_g = jax.nn.sigmoid(gates[3 * H:4 * H])
        c = f_g * c + i_g * g_g
        h = o_g * jnp.tanh(c)
        return (h, c), h

    init = (jnp.zeros((H,), jnp.float32), jnp.zeros((H,), jnp.float32))
    _, h_seq = jax.lax.scan(step, init, gx)                 # (S, H)
    preds = h_seq @ w_fc.T + b_fc                           # (S, O)
    return preds[-1]


# ----------------------------------------------------------------------------
if __name__ == "__main__":
    # TODO(synk): the module's persistent self.hidden_cell across forward calls
    # is not modeled; each call starts from zero (h0, c0) like a fresh module.
    key = jax.random.PRNGKey(0)

    # Test 1: small shapes consistent with the module (single K tile).
    SEQ, INPUT_SIZE, HIDDEN_SIZE, OUTPUT_SIZE = 8, 16, 32, 1
    key, xkey, pkey = jax.random.split(key, 3)
    x_seq = jax.random.normal(xkey, (SEQ, INPUT_SIZE), jnp.float32)
    params = init_params(pkey, INPUT_SIZE, HIDDEN_SIZE, OUTPUT_SIZE)
    prepped = prepare_params(params, INPUT_SIZE, HIDDEN_SIZE, OUTPUT_SIZE)
    out = jax.block_until_ready(lstm_forward(x_seq, prepped))
    ref = jax.block_until_ready(reference_forward(x_seq, params))
    assert out.shape == (OUTPUT_SIZE,), out.shape
    assert jnp.allclose(out, ref, atol=1e-3, rtol=1e-3), (
        float(jnp.max(jnp.abs(out - ref))))

    # Test 2: exercises the K-tiled accumulation path (4 K tiles) and the
    # time/sublane padding (S=12 -> Sp=16).
    SEQ2, INPUT_SIZE2 = 12, 1024
    key, xkey2, pkey2 = jax.random.split(key, 3)
    x_seq2 = jax.random.normal(xkey2, (SEQ2, INPUT_SIZE2), jnp.float32)
    params2 = init_params(pkey2, INPUT_SIZE2, HIDDEN_SIZE, OUTPUT_SIZE)
    prepped2 = prepare_params(params2, INPUT_SIZE2, HIDDEN_SIZE, OUTPUT_SIZE,
                              tk_max=256)
    out2 = jax.block_until_ready(lstm_forward(x_seq2, prepped2))
    ref2 = jax.block_until_ready(reference_forward(x_seq2, params2))
    assert out2.shape == (OUTPUT_SIZE,), out2.shape
    assert jnp.allclose(out2, ref2, atol=1e-3, rtol=1e-3), (
        float(jnp.max(jnp.abs(out2 - ref2))))

    print("KERNEL_OK")
</pallas_src>

<mosaic_0001>
module attributes {stable_mosaic.version = 11 : i64} {
  func.func @_lstm_fused_kernel(%arg0: i32, %arg1: memref<8x128xbf16, #tpu.memory_space<vmem>>, %arg2: memref<128x512xbf16, #tpu.memory_space<vmem>>, %arg3: memref<128x512xf32, #tpu.memory_space<vmem>>, %arg4: memref<1x512xf32, #tpu.memory_space<vmem>>, %arg5: memref<128x128xf32, #tpu.memory_space<vmem>>, %arg6: memref<1x128xf32, #tpu.memory_space<vmem>>, %arg7: memref<8x128xf32, #tpu.memory_space<vmem>>, %arg8: memref<8x512xf32, #tpu.memory_space<vmem>>) attributes {dimension_semantics = [#tpu.dimension_semantics<arbitrary>], iteration_bounds = array<i64: 1>, scalar_prefetch = 0 : i64, scratch_operands = 1 : i64, tpu.core_type = #tpu.core_type<tc>, window_params = [{transform_indices = @transform_0, window_bounds = array<i64: 8, 128>}, {transform_indices = @transform_1, window_bounds = array<i64: 128, 512>}, {pipeline_mode = #tpu.pipeline_mode<synchronous>, transform_indices = @transform_2, window_bounds = array<i64: 128, 512>}, {pipeline_mode = #tpu.pipeline_mode<synchronous>, transform_indices = @transform_3, window_bounds = array<i64: 1, 512>}, {pipeline_mode = #tpu.pipeline_mode<synchronous>, transform_indices = @transform_4, window_bounds = array<i64: 128, 128>}, {pipeline_mode = #tpu.pipeline_mode<synchronous>, transform_indices = @transform_5, window_bounds = array<i64: 1, 128>}, {pipeline_mode = #tpu.pipeline_mode<synchronous>, transform_indices = @transform_6, window_bounds = array<i64: 8, 128>}]} {
    %c0_i32 = arith.constant 0 : i32
    %0 = arith.cmpi eq, %arg0, %c0_i32 : i32
    %1 = arith.extui %0 : i1 to i32
    %c0_i32_0 = arith.constant 0 : i32
    %2 = arith.cmpi ne, %1, %c0_i32_0 : i32
    scf.if %2 {
      %c0_10 = arith.constant 0 : index
      %c0_11 = arith.constant 0 : index
      %12 = vector.load %arg4[%c0_10, %c0_11] : memref<1x512xf32, #tpu.memory_space<vmem>>, vector<1x512xf32>
      %13 = vector.shape_cast %12 : vector<1x512xf32> to vector<1x512xf32>
      %14 = vector.broadcast %13 : vector<1x512xf32> to vector<8x512xf32>
      %c0_12 = arith.constant 0 : index
      %c0_13 = arith.constant 0 : index
      %15 = vector.load %arg8[%c0_12, %c0_13] : memref<8x512xf32, #tpu.memory_space<vmem>>, vector<8x512xf32>
      tpu.vector_store %arg8[%c0_12, %c0_13], %14 {strides = array<i32>} : memref<8x512xf32, #tpu.memory_space<vmem>>, vector<8x512xf32>,
    } else {
    }
    %c0 = arith.constant 0 : index
    %c0_1 = arith.constant 0 : index
    %3 = vector.load %arg8[%c0, %c0_1] : memref<8x512xf32, #tpu.memory_space<vmem>>, vector<8x512xf32>
    %c0_2 = arith.constant 0 : index
    %c0_3 = arith.constant 0 : index
    %4 = vector.load %arg1[%c0_2, %c0_3] : memref<8x128xbf16, #tpu.memory_space<vmem>>, vector<8x128xbf16>
    %c0_4 = arith.constant 0 : index
    %c0_5 = arith.constant 0 : index
    %5 = vector.load %arg2[%c0_4, %c0_5] : memref<128x512xbf16, #tpu.memory_space<vmem>>, vector<128x512xbf16>
    %cst = arith.constant dense<0.000000e+00> : vector<8x512xf32>
    %6 = tpu.matmul %4, %5, %cst {dimension_numbers = #tpu.dot_dimension_numbers<[1], [0], [0], [1], [0, 0, 1, 1], [], []>} : vector<8x128xbf16>, vector<128x512xbf16>, vector<8x512xf32> -> vector<8x512xf32>
    %7 = arith.addf %3, %6 : vector<8x512xf32>
    %c0_6 = arith.constant 0 : index
    %c0_7 = arith.constant 0 : index
    %8 = vector.load %arg8[%c0_6, %c0_7] : memref<8x512xf32, #tpu.memory_space<vmem>>, vector<8x512xf32>
    tpu.vector_store %arg8[%c0_6, %c0_7], %7 {strides = array<i32>} : memref<8x512xf32, #tpu.memory_space<vmem>>, vector<8x512xf32>,
    %c0_i32_8 = arith.constant 0 : i32
    %9 = arith.cmpi eq, %arg0, %c0_i32_8 : i32
    %10 = arith.extui %9 : i1 to i32
    %c0_i32_9 = arith.constant 0 : i32
    %11 = arith.cmpi ne, %10, %c0_i32_9 : i32
    scf.if %11 {
      %cst_10 = arith.constant 0.000000e+00 : f32
      %12 = vector.broadcast %cst_10 : f32 to vector<8x128xf32>
      %cst_11 = arith.constant 0.000000e+00 : f32
      %13 = vector.broadcast %cst_11 : f32 to vector<8x128xf32>
      %c0_i32_12 = arith.constant 0 : i32
      %14 = arith.index_cast %c0_i32_12 : i32 to index
      %c0_13 = arith.constant 0 : index
      %15 = vector.load %arg8[%14, %c0_13] : memref<8x512xf32, #tpu.memory_space<vmem>>, vector<1x512xf32>
      %c0_14 = arith.constant 0 : index
      %c0_15 = arith.constant 0 : index
      %16 = vector.load %arg3[%c0_14, %c0_15] : memref<128x512xf32, #tpu.memory_space<vmem>>, vector<128x512xf32>
      %cst_16 = arith.constant dense<0.000000e+00> : vector<8x512xf32>
      %17 = tpu.matmul %12, %16, %cst_16 {dimension_numbers = #tpu.dot_dimension_numbers<[1], [0], [0], [1], [0, 0, 1, 1], [], []>} : vector<8x128xf32>, vector<128x512xf32>, vector<8x512xf32> -> vector<8x512xf32>
      %18 = vector.broadcast %15 : vector<1x512xf32> to vector<8x512xf32>
      %19 = arith.addf %18, %17 : vector<8x512xf32>
      %20 = vector.extract_strided_slice %19 {offsets = [0, 0], sizes = [8, 384], strides = [1, 1]} : vector<8x512xf32> to vector<8x384xf32>
      %21 = arith.negf %20 : vector<8x384xf32>
      %22 = math.exp %21 : vector<8x384xf32>
      %cst_17 = arith.constant 1.000000e+00 : f32
      %23 = vector.broadcast %cst_17 : f32 to vector<8x384xf32>
      %24 = arith.addf %23, %22 : vector<8x384xf32>
      %25 = arith.divf %23, %24 : vector<8x384xf32>
      %26 = vector.extract_strided_slice %25 {offsets = [0, 0], sizes = [8, 128], strides = [1, 1]} : vector<8x384xf32> to vector<8x128xf32>
      %27 = vector.extract_strided_slice %25 {offsets = [0, 128], sizes = [8, 128], strides = [1, 1]} : vector<8x384xf32> to vector<8x128xf32>
      %28 = vector.extract_strided_slice %25 {offsets = [0, 256], sizes = [8, 128], strides = [1, 1]} : vector<8x384xf32> to vector<8x128xf32>
      %29 = vector.extract_strided_slice %19 {offsets = [0, 384], sizes = [8, 128], strides = [1, 1]} : vector<8x512xf32> to vector<8x128xf32>
      %30 = math.tanh %29 : vector<8x128xf32>
      %31 = arith.mulf %27, %13 : vector<8x128xf32>
      %32 = arith.mulf %26, %30 : vector<8x128xf32>
      %33 = arith.addf %31, %32 : vector<8x128xf32>
      %34 = math.tanh %33 : vector<8x128xf32>
      %35 = arith.mulf %28, %34 : vector<8x128xf32>
      %c1_i32 = arith.constant 1 : i32
      %36 = arith.index_cast %c1_i32 : i32 to index
      %c0_18 = arith.constant 0 : index
      %37 = vector.load %arg8[%36, %c0_18] : memref<8x512xf32, #tpu.memory_space<vmem>>, vector<1x512xf32>
      %c0_19 = arith.constant 0 : index
      %c0_20 = arith.constant 0 : index
      %38 = vector.load %arg3[%c0_19, %c0_20] : memref<128x512xf32, #tpu.memory_space<vmem>>, vector<128x512xf32>
      %cst_21 = arith.constant dense<0.000000e+00> : vector<8x512xf32>
      %39 = tpu.matmul %35, %38, %cst_21 {dimension_numbers = #tpu.dot_dimension_numbers<[1], [0], [0], [1], [0, 0, 1, 1], [], []>} : vector<8x128xf32>, vector<128x512xf32>, vector<8x512xf32> -> vector<8x512xf32>
      %40 = vector.broadcast %37 : vector<1x512xf32> to vector<8x512xf32>
      %41 = arith.addf %40, %39 : vector<8x512xf32>
      %42 = vector.extract_strided_slice %41 {offsets = [0, 0], sizes = [8, 384], strides = [1, 1]} : vector<8x512xf32> to vector<8x384xf32>
      %43 = arith.negf %42 : vector<8x384xf32>
      %44 = math.exp %43 : vector<8x384xf32>
      %cst_22 = arith.constant 1.000000e+00 : f32
      %45 = vector.broadcast %cst_22 : f32 to vector<8x384xf32>
      %46 = arith.addf %45, %44 : vector<8x384xf32>
      %47 = arith.divf %45, %46 : vector<8x384xf32>
      %48 = vector.extract_strided_slice %47 {offsets = [0, 0], sizes = [8, 128], strides = [1, 1]} : vector<8x384xf32> to vector<8x128xf32>
      %49 = vector.extract_strided_slice %47 {offsets = [0, 128], sizes = [8, 128], strides = [1, 1]} : vector<8x384xf32> to vector<8x128xf32>
      %50 = vector.extract_strided_slice %47 {offsets = [0, 256], sizes = [8, 128], strides = [1, 1]} : vector<8x384xf32> to vector<8x128xf32>
      %51 = vector.extract_strided_slice %41 {offsets = [0, 384], sizes = [8, 128], strides = [1, 1]} : vector<8x512xf32> to vector<8x128xf32>
      %52 = math.tanh %51 : vector<8x128xf32>
      %53 = arith.mulf %49, %33 : vector<8x128xf32>
      %54 = arith.mulf %48, %52 : vector<8x128xf32>
      %55 = arith.addf %53, %54 : vector<8x128xf32>
      %56 = math.tanh %55 : vector<8x128xf32>
      %57 = arith.mulf %50, %56 : vector<8x128xf32>
      %c2_i32 = arith.constant 2 : i32
      %58 = arith.index_cast %c2_i32 : i32 to index
      %c0_23 = arith.constant 0 : index
      %59 = vector.load %arg8[%58, %c0_23] : memref<8x512xf32, #tpu.memory_space<vmem>>, vector<1x512xf32>
      %c0_24 = arith.constant 0 : index
      %c0_25 = arith.constant 0 : index
      %60 = vector.load %arg3[%c0_24, %c0_25] : memref<128x512xf32, #tpu.memory_space<vmem>>, vector<128x512xf32>
      %cst_26 = arith.constant dense<0.000000e+00> : vector<8x512xf32>
      %61 = tpu.matmul %57, %60, %cst_26 {dimension_numbers = #tpu.dot_dimension_numbers<[1], [0], [0], [1], [0, 0, 1, 1], [], []>} : vector<8x128xf32>, vector<128x512xf32>, vector<8x512xf32> -> vector<8x512xf32>
      %62 = vector.broadcast %59 : vector<1x512xf32> to vector<8x512xf32>
      %63 = arith.addf %62, %61 : vector<8x512xf32>
      %64 = vector.extract_strided_slice %63 {offsets = [0, 0], sizes = [8, 384], strides = [1, 1]} : vector<8x512xf32> to vector<8x384xf32>
      %65 = arith.negf %64 : vector<8x384xf32>
      %66 = math.exp %65 : vector<8x384xf32>
      %cst_27 = arith.constant 1.000000e+00 : f32
      %67 = vector.broadcast %cst_27 : f32 to vector<8x384xf32>
      %68 = arith.addf %67, %66 : vector<8x384xf32>
      %69 = arith.divf %67, %68 : vector<8x384xf32>
      %70 = vector.extract_strided_slice %69 {offsets = [0, 0], sizes = [8, 128], strides = [1, 1]} : vector<8x384xf32> to vector<8x128xf32>
      %71 = vector.extract_strided_slice %69 {offsets = [0, 128], sizes = [8, 128], strides = [1, 1]} : vector<8x384xf32> to vector<8x128xf32>
      %72 = vector.extract_strided_slice %69 {offsets = [0, 256], sizes = [8, 128], strides = [1, 1]} : vector<8x384xf32> to vector<8x128xf32>
      %73 = vector.extract_strided_slice %63 {offsets = [0, 384], sizes = [8, 128], strides = [1, 1]} : vector<8x512xf32> to vector<8x128xf32>
      %74 = math.tanh %73 : vector<8x128xf32>
      %75 = arith.mulf %71, %55 : vector<8x128xf32>
      %76 = arith.mulf %70, %74 : vector<8x128xf32>
      %77 = arith.addf %75, %76 : vector<8x128xf32>
      %78 = math.tanh %77 : vector<8x128xf32>
      %79 = arith.mulf %72, %78 : vector<8x128xf32>
      %c3_i32 = arith.constant 3 : i32
      %80 = arith.index_cast %c3_i32 : i32 to index
      %c0_28 = arith.constant 0 : index
      %81 = vector.load %arg8[%80, %c0_28] : memref<8x512xf32, #tpu.memory_space<vmem>>, vector<1x512xf32>
      %c0_29 = arith.constant 0 : index
      %c0_30 = arith.constant 0 : index
      %82 = vector.load %arg3[%c0_29, %c0_30] : memref<128x512xf32, #tpu.memory_space<vmem>>, vector<128x512xf32>
      %cst_31 = arith.constant dense<0.000000e+00> : vector<8x512xf32>
      %83 = tpu.matmul %79, %82, %cst_31 {dimension_numbers = #tpu.dot_dimension_numbers<[1], [0], [0], [1], [0, 0, 1, 1], [], []>} : vector<8x128xf32>, vector<128x512xf32>, vector<8x512xf32> -> vector<8x512xf32>
      %84 = vector.broadcast %81 : vector<1x512xf32> to vector<8x512xf32>
      %85 = arith.addf %84, %83 : vector<8x512xf32>
      %86 = vector.extract_strided_slice %85 {offsets = [0, 0], sizes = [8, 384], strides = [1, 1]} : vector<8x512xf32> to vector<8x384xf32>
      %87 = arith.negf %86 : vector<8x384xf32>
      %88 = math.exp %87 : vector<8x384xf32>
      %cst_32 = arith.constant 1.000000e+00 : f32
      %89 = vector.broadcast %cst_32 : f32 to vector<8x384xf32>
      %90 = arith.addf %89, %88 : vector<8x384xf32>
      %91 = arith.divf %89, %90 : vector<8x384xf32>
      %92 = vector.extract_strided_slice %91 {offsets = [0, 0], sizes = [8, 128], strides = [1, 1]} : vector<8x384xf32> to vector<8x128xf32>
      %93 = vector.extract_strided_slice %91 {offsets = [0, 128], sizes = [8, 128], strides = [1, 1]} : vector<8x384xf32> to vector<8x128xf32>
      %94 = vector.extract_strided_slice %91 {offsets = [0, 256], sizes = [8, 128], strides = [1, 1]} : vector<8x384xf32> to vector<8x128xf32>
      %95 = vector.extract_strided_slice %85 {offsets = [0, 384], sizes = [8, 128], strides = [1, 1]} : vector<8x512xf32> to vector<8x128xf32>
      %96 = math.tanh %95 : vector<8x128xf32>
      %97 = arith.mulf %93, %77 : vector<8x128xf32>
      %98 = arith.mulf %92, %96 : vector<8x128xf32>
      %99 = arith.addf %97, %98 : vector<8x128xf32>
      %100 = math.tanh %99 : vector<8x128xf32>
      %101 = arith.mulf %94, %100 : vector<8x128xf32>
      %c4_i32 = arith.constant 4 : i32
      %102 = arith.index_cast %c4_i32 : i32 to index
      %c0_33 = arith.constant 0 : index
      %103 = vector.load %arg8[%102, %c0_33] : memref<8x512xf32, #tpu.memory_space<vmem>>, vector<1x512xf32>
      %c0_34 = arith.constant 0 : index
      %c0_35 = arith.constant 0 : index
      %104 = vector.load %arg3[%c0_34, %c0_35] : memref<128x512xf32, #tpu.memory_space<vmem>>, vector<128x512xf32>
      %cst_36 = arith.constant dense<0.000000e+00> : vector<8x512xf32>
      %105 = tpu.matmul %101, %104, %cst_36 {dimension_numbers = #tpu.dot_dimension_numbers<[1], [0], [0], [1], [0, 0, 1, 1], [], []>} : vector<8x128xf32>, vector<128x512xf32>, vector<8x512xf32> -> vector<8x512xf32>
      %106 = vector.broadcast %103 : vector<1x512xf32> to vector<8x512xf32>
      %107 = arith.addf %106, %105 : vector<8x512xf32>
      %108 = vector.extract_strided_slice %107 {offsets = [0, 0], sizes = [8, 384], strides = [1, 1]} : vector<8x512xf32> to vector<8x384xf32>
      %109 = arith.negf %108 : vector<8x384xf32>
      %110 = math.exp %109 : vector<8x384xf32>
      %cst_37 = arith.constant 1.000000e+00 : f32
      %111 = vector.broadcast %cst_37 : f32 to vector<8x384xf32>
      %112 = arith.addf %111, %110 : vector<8x384xf32>
      %113 = arith.divf %111, %112 : vector<8x384xf32>
      %114 = vector.extract_strided_slice %113 {offsets = [0, 0], sizes = [8, 128], strides = [1, 1]} : vector<8x384xf32> to vector<8x128xf32>
      %115 = vector.extract_strided_slice %113 {offsets = [0, 128], sizes = [8, 128], strides = [1, 1]} : vector<8x384xf32> to vector<8x128xf32>
      %116 = vector.extract_strided_slice %113 {offsets = [0, 256], sizes = [8, 128], strides = [1, 1]} : vector<8x384xf32> to vector<8x128xf32>
      %117 = vector.extract_strided_slice %107 {offsets = [0, 384], sizes = [8, 128], strides = [1, 1]} : vector<8x512xf32> to vector<8x128xf32>
      %118 = math.tanh %117 : vector<8x128xf32>
      %119 = arith.mulf %115, %99 : vector<8x128xf32>
      %120 = arith.mulf %114, %118 : vector<8x128xf32>
      %121 = arith.addf %119, %120 : vector<8x128xf32>
      %122 = math.tanh %121 : vector<8x128xf32>
      %123 = arith.mulf %116, %122 : vector<8x128xf32>
      %c5_i32 = arith.constant 5 : i32
      %124 = arith.index_cast %c5_i32 : i32 to index
      %c0_38 = arith.constant 0 : index
      %125 = vector.load %arg8[%124, %c0_38] : memref<8x512xf32, #tpu.memory_space<vmem>>, vector<1x512xf32>
      %c0_39 = arith.constant 0 : index
      %c0_40 = arith.constant 0 : index
      %126 = vector.load %arg3[%c0_39, %c0_40] : memref<128x512xf32, #tpu.memory_space<vmem>>, vector<128x512xf32>
      %cst_41 = arith.constant dense<0.000000e+00> : vector<8x512xf32>
      %127 = tpu.matmul %123, %126, %cst_41 {dimension_numbers = #tpu.dot_dimension_numbers<[1], [0], [0], [1], [0, 0, 1, 1], [], []>} : vector<8x128xf32>, vector<128x512xf32>, vector<8x512xf32> -> vector<8x512xf32>
      %128 = vector.broadcast %125 : vector<1x512xf32> to vector<8x512xf32>
      %129 = arith.addf %128, %127 : vector<8x512xf32>
      %130 = vector.extract_strided_slice %129 {offsets = [0, 0], sizes = [8, 384], strides = [1, 1]} : vector<8x512xf32> to vector<8x384xf32>
      %131 = arith.negf %130 : vector<8x384xf32>
      %132 = math.exp %131 : vector<8x384xf32>
      %cst_42 = arith.constant 1.000000e+00 : f32
      %133 = vector.broadcast %cst_42 : f32 to vector<8x384xf32>
      %134 = arith.addf %133, %132 : vector<8x384xf32>
      %135 = arith.divf %133, %134 : vector<8x384xf32>
      %136 = vector.extract_strided_slice %135 {offsets = [0, 0], sizes = [8, 128], strides = [1, 1]} : vector<8x384xf32> to vector<8x128xf32>
      %137 = vector.extract_strided_slice %135 {offsets = [0, 128], sizes = [8, 128], strides = [1, 1]} : vector<8x384xf32> to vector<8x128xf32>
      %138 = vector.extract_strided_slice %135 {offsets = [0, 256], sizes = [8, 128], strides = [1, 1]} : vector<8x384xf32> to vector<8x128xf32>
      %139 = vector.extract_strided_slice %129 {offsets = [0, 384], sizes = [8, 128], strides = [1, 1]} : vector<8x512xf32> to vector<8x128xf32>
      %140 = math.tanh %139 : vector<8x128xf32>
      %141 = arith.mulf %137, %121 : vector<8x128xf32>
      %142 = arith.mulf %136, %140 : vector<8x128xf32>
      %143 = arith.addf %141, %142 : vector<8x128xf32>
      %144 = math.tanh %143 : vector<8x128xf32>
      %145 = arith.mulf %138, %144 : vector<8x128xf32>
      %c6_i32 = arith.constant 6 : i32
      %146 = arith.index_cast %c6_i32 : i32 to index
      %c0_43 = arith.constant 0 : index
      %147 = vector.load %arg8[%146, %c0_43] : memref<8x512xf32, #tpu.memory_space<vmem>>, vector<1x512xf32>
      %c0_44 = arith.constant 0 : index
      %c0_45 = arith.constant 0 : index
      %148 = vector.load %arg3[%c0_44, %c0_45] : memref<128x512xf32, #tpu.memory_space<vmem>>, vector<128x512xf32>
      %cst_46 = arith.constant dense<0.000000e+00> : vector<8x512xf32>
      %149 = tpu.matmul %145, %148, %cst_46 {dimension_numbers = #tpu.dot_dimension_numbers<[1], [0], [0], [1], [0, 0, 1, 1], [], []>} : vector<8x128xf32>, vector<128x512xf32>, vector<8x512xf32> -> vector<8x512xf32>
      %150 = vector.broadcast %147 : vector<1x512xf32> to vector<8x512xf32>
      %151 = arith.addf %150, %149 : vector<8x512xf32>
      %152 = vector.extract_strided_slice %151 {offsets = [0, 0], sizes = [8, 384], strides = [1, 1]} : vector<8x512xf32> to vector<8x384xf32>
      %153 = arith.negf %152 : vector<8x384xf32>
      %154 = math.exp %153 : vector<8x384xf32>
      %cst_47 = arith.constant 1.000000e+00 : f32
      %155 = vector.broadcast %cst_47 : f32 to vector<8x384xf32>
      %156 = arith.addf %155, %154 : vector<8x384xf32>
      %157 = arith.divf %155, %156 : vector<8x384xf32>
      %158 = vector.extract_strided_slice %157 {offsets = [0, 0], sizes = [8, 128], strides = [1, 1]} : vector<8x384xf32> to vector<8x128xf32>
      %159 = vector.extract_strided_slice %157 {offsets = [0, 128], sizes = [8, 128], strides = [1, 1]} : vector<8x384xf32> to vector<8x128xf32>
      %160 = vector.extract_strided_slice %157 {offsets = [0, 256], sizes = [8, 128], strides = [1, 1]} : vector<8x384xf32> to vector<8x128xf32>
      %161 = vector.extract_strided_slice %151 {offsets = [0, 384], sizes = [8, 128], strides = [1, 1]} : vector<8x512xf32> to vector<8x128xf32>
      %162 = math.tanh %161 : vector<8x128xf32>
      %163 = arith.mulf %159, %143 : vector<8x128xf32>
      %164 = arith.mulf %158, %162 : vector<8x128xf32>
      %165 = arith.addf %163, %164 : vector<8x128xf32>
      %166 = math.tanh %165 : vector<8x128xf32>
      %167 = arith.mulf %160, %166 : vector<8x128xf32>
      %c7_i32 = arith.constant 7 : i32
      %168 = arith.index_cast %c7_i32 : i32 to index
      %c0_48 = arith.constant 0 : index
      %169 = vector.load %arg8[%168, %c0_48] : memref<8x512xf32, #tpu.memory_space<vmem>>, vector<1x512xf32>
      %c0_49 = arith.constant 0 : index
      %c0_50 = arith.constant 0 : index
      %170 = vector.load %arg3[%c0_49, %c0_50] : memref<128x512xf32, #tpu.memory_space<vmem>>, vector<128x512xf32>
      %cst_51 = arith.constant dense<0.000000e+00> : vector<8x512xf32>
      %171 = tpu.matmul %167, %170, %cst_51 {dimension_numbers = #tpu.dot_dimension_numbers<[1], [0], [0], [1], [0, 0, 1, 1], [], []>} : vector<8x128xf32>, vector<128x512xf32>, vector<8x512xf32> -> vector<8x512xf32>
      %172 = vector.broadcast %169 : vector<1x512xf32> to vector<8x512xf32>
      %173 = arith.addf %172, %171 : vector<8x512xf32>
      %174 = vector.extract_strided_slice %173 {offsets = [0, 0], sizes = [8, 384], strides = [1, 1]} : vector<8x512xf32> to vector<8x384xf32>
      %175 = arith.negf %174 : vector<8x384xf32>
      %176 = math.exp %175 : vector<8x384xf32>
      %cst_52 = arith.constant 1.000000e+00 : f32
      %177 = vector.broadcast %cst_52 : f32 to vector<8x384xf32>
      %178 = arith.addf %177, %176 : vector<8x384xf32>
      %179 = arith.divf %177, %178 : vector<8x384xf32>
      %180 = vector.extract_strided_slice %179 {offsets = [0, 0], sizes = [8, 128], strides = [1, 1]} : vector<8x384xf32> to vector<8x128xf32>
      %181 = vector.extract_strided_slice %179 {offsets = [0, 128], sizes = [8, 128], strides = [1, 1]} : vector<8x384xf32> to vector<8x128xf32>
      %182 = vector.extract_strided_slice %179 {offsets = [0, 256], sizes = [8, 128], strides = [1, 1]} : vector<8x384xf32> to vector<8x128xf32>
      %183 = vector.extract_strided_slice %173 {offsets = [0, 384], sizes = [8, 128], strides = [1, 1]} : vector<8x512xf32> to vector<8x128xf32>
      %184 = math.tanh %183 : vector<8x128xf32>
      %185 = arith.mulf %181, %165 : vector<8x128xf32>
      %186 = arith.mulf %180, %184 : vector<8x128xf32>
      %187 = arith.addf %185, %186 : vector<8x128xf32>
      %188 = math.tanh %187 : vector<8x128xf32>
      %189 = arith.mulf %182, %188 : vector<8x128xf32>
      %c8_i32 = arith.constant 8 : i32
      %c0_53 = arith.constant 0 : index
      %c0_54 = arith.constant 0 : index
      %190 = vector.load %arg5[%c0_53, %c0_54] : memref<128x128xf32, #tpu.memory_space<vmem>>, vector<128x128xf32>
      %cst_55 = arith.constant dense<0.000000e+00> : vector<8x128xf32>
      %191 = tpu.matmul %189, %190, %cst_55 {dimension_numbers = #tpu.dot_dimension_numbers<[1], [0], [0], [1], [0, 0, 1, 1], [], []>} : vector<8x128xf32>, vector<128x128xf32>, vector<8x128xf32> -> vector<8x128xf32>
      %c0_56 = arith.constant 0 : index
      %c0_57 = arith.constant 0 : index
      %192 = vector.load %arg6[%c0_56, %c0_57] : memref<1x128xf32, #tpu.memory_space<vmem>>, vector<1x128xf32>
      %193 = vector.broadcast %192 : vector<1x128xf32> to vector<8x128xf32>
      %194 = arith.addf %191, %193 : vector<8x128xf32>
      %c0_58 = arith.constant 0 : index
      %c0_59 = arith.constant 0 : index
      %195 = vector.load %arg7[%c0_58, %c0_59] : memref<8x128xf32, #tpu.memory_space<vmem>>, vector<8x128xf32>
      tpu.vector_store %arg7[%c0_58, %c0_59], %194 {strides = array<i32>} : memref<8x128xf32, #tpu.memory_space<vmem>>, vector<8x128xf32>,
    } else {
    }
    return
  }
  func.func @transform_0(%arg0: i32) -> (i32, i32) {
    %c0_i32 = arith.constant 0 : i32
    %c0_i32_0 = arith.constant 0 : i32
    return %c0_i32, %arg0 : i32, i32
  }
  func.func @transform_1(%arg0: i32) -> (i32, i32) {
    %c0_i32 = arith.constant 0 : i32
    %c0_i32_0 = arith.constant 0 : i32
    return %arg0, %c0_i32 : i32, i32
  }
  func.func @transform_2(%arg0: i32) -> (i32, i32) {
    %c0_i32 = arith.constant 0 : i32
    %c0_i32_0 = arith.constant 0 : i32
    %c0_i32_1 = arith.constant 0 : i32
    return %c0_i32, %c0_i32_0 : i32, i32
  }
  func.func @transform_3(%arg0: i32) -> (i32, i32) {
    %c0_i32 = arith.constant 0 : i32
    %c0_i32_0 = arith.constant 0 : i32
    %c0_i32_1 = arith.constant 0 : i32
    return %c0_i32, %c0_i32_0 : i32, i32
  }
  func.func @transform_4(%arg0: i32) -> (i32, i32) {
    %c0_i32 = arith.constant 0 : i32
    %c0_i32_0 = arith.constant 0 : i32
    %c0_i32_1 = arith.constant 0 : i32
    return %c0_i32, %c0_i32_0 : i32, i32
  }
  func.func @transform_5(%arg0: i32) -> (i32, i32) {
    %c0_i32 = arith.constant 0 : i32
    %c0_i32_0 = arith.constant 0 : i32
    %c0_i32_1 = arith.constant 0 : i32
    return %c0_i32, %c0_i32_0 : i32, i32
  }
  func.func @transform_6(%arg0: i32) -> (i32, i32) {
    %c0_i32 = arith.constant 0 : i32
    %c0_i32_0 = arith.constant 0 : i32
    %c0_i32_1 = arith.constant 0 : i32
    return %c0_i32, %c0_i32_0 : i32, i32
  }
}

</mosaic_0001>

<bundles_post_ra>
// kernel: tpu_custom_call.1
= control target key start
LH: loop header
LB: loop body
LE: loop exit
PB: predicated region body
PF: predicated region fallthrough
CT: control target
= control target key end

     0   :  { %11 = vsyncpa [#allocation4], 0  ;;  %s3597_s0 = inlined_call_operand.hbm [shape: bf16[8,128], index: 0, kind: input, shape index: {}]   ;;  %s3598_s1 = inlined_call_operand.hbm [shape: bf16[128,512], index: 1, kind: input, shape index: {}]   ;;  %s3599_s2 = inlined_call_operand.hbm [shape: f32[128,512], index: 2, kind: input, shape index: {}]   ;;  %s3600_s3 = inlined_call_operand.vmem [shape: f32[1,512], index: 3, kind: input, shape index: {}]   ;;  %s3601_s4 = inlined_call_operand.hbm [shape: f32[128,128], index: 4, kind: input, shape index: {}]   ;;  %s3602_s5 = inlined_call_operand.vmem [shape: f32[1,128], index: 5, kind: input, shape index: {}]   ;;  %s3603_s6 = inlined_call_operand.hbm [shape: f32[8,128], index: 6, kind: output, shape index: {}]  }
   0x1   :  { %12 = vsyncpa [#allocation7], 0 }
   0x2   :  { %13 = vsyncpa [#allocation10], 0 }
   0x3   :  { %14 = vsyncpa [#allocation5], 0  ;;  %s3070_s21 = smov [#allocation6]   ;;  %s2952_s25 = scalar_lea.hbm %s3598_s1, 4096 }
   0x4   :  { %s30_s22 = sshll.u32 %s3070_s21, 4  ;;  %p2953_p0 = scmp.ne.s32.totalorder %s3598_s1, %s2952_s25  ;;  %s31_s22 = int_to_ptr.vmem [resolvable:$true] %s30_s22 }
   0x5   :  { %p2956_p1 = scmp.lt.u32.totalorder %s2952_s25, %s3598_s1 }
   0x7   :  { %p2958_p2 = pnand %p2956_p1, %p2953_p0 }
   0x9   :  { %2961 = shalt.err (!%p2958_p2)
}
   0xa   :  { %s2962_s30 = scalar_lea.vmem %s31_s22, 4096  ;;  %p2967_p4 = scmp.lt.s32.totalorder %s31_s22, %s31_s22 }
   0xb   :  { %p2963_p3 = scmp.ne.s32.totalorder %s31_s22, %s2962_s30  ;;  %p2968_p5 = scmp.lt.s32.totalorder %s2962_s30, %s2962_s30 }
   0xd   :  { %p2969_p6 = por %p2968_p5, %p2967_p4 }
   0xf   :  { %p2970_p7 = pnand %p2969_p6, %p2963_p3 }
  0x11   :  { %2973 = shalt.err (!%p2970_p7)
}
  0x12   :  { %s3071_s7 = smov 256   ;;  %s3072_s8 = smov 16  }
  0x13   :  { %36 = dma.hbm_to_vmem [thread:$0]  %s3598_s1, 4096, %s31_s22, [#allocation7], %s3071_s7, %s3071_s7, %s3072_s8  }
  0x14   :  { %s3073_s11 = smov [#allocation3]   ;;  %s3074_s13 = smov [#allocation8]  }
  0x15   :  { %s21_s12 = sshll.u32 %s3073_s11, 4  ;;  %s42_s14 = sshll.u32 %s3074_s13, 4  ;;  %s22_s12 = int_to_ptr.vmem [resolvable:$true] %s21_s12  ;;  %s43_s14 = int_to_ptr.vmem [resolvable:$true] %s42_s14 }
  0x16   :  { %s2974_s17 = scalar_lea.hbm %s3597_s0, 64 }
  0x17   :  { %p2975_p8 = scmp.ne.s32.totalorder %s3597_s0, %s2974_s17  ;;  %p2978_p9 = scmp.lt.u32.totalorder %s2974_s17, %s3597_s0 }
  0x19   :  { %p2980_p10 = pnand %p2978_p9, %p2975_p8 }
  0x1b   :  { %2983 = shalt.err (!%p2980_p10)
}
  0x1c   :  { %s2984_s1 = scalar_lea.vmem %s22_s12, 64  ;;  %p2989_p12 = scmp.lt.s32.totalorder %s22_s12, %s22_s12 }
  0x1d   :  { %p2985_p11 = scmp.ne.s32.totalorder %s22_s12, %s2984_s1  ;;  %p2990_p13 = scmp.lt.s32.totalorder %s2984_s1, %s2984_s1 }
  0x1f   :  { %p2991_p0 = por %p2990_p13, %p2989_p12 }
  0x21   :  { %p2992_p1 = pnand %p2991_p0, %p2985_p11 }
  0x23   :  { %2995 = shalt.err (!%p2992_p1)
}
  0x24   :  { %24 = dma.hbm_to_vmem [thread:$0]  %s3597_s0, 64, %s22_s12, [#allocation4]  }
  0x25   :  { %s2996_s26 = scalar_lea.hbm %s3599_s2, 8192 }
  0x26   :  { %p2997_p2 = scmp.ne.s32.totalorder %s3599_s2, %s2996_s26  ;;  %p3000_p3 = scmp.lt.u32.totalorder %s2996_s26, %s3599_s2 }
  0x28   :  { %p3002_p4 = pnand %p3000_p3, %p2997_p2 }
  0x2a   :  { %3005 = shalt.err (!%p3002_p4)
}
  0x2b   :  { %s3006_s7 = scalar_lea.vmem %s43_s14, 8192  ;;  %p3011_p6 = scmp.lt.s32.totalorder %s43_s14, %s43_s14 }
  0x2c   :  { %p3007_p5 = scmp.ne.s32.totalorder %s43_s14, %s3006_s7  ;;  %p3012_p7 = scmp.lt.s32.totalorder %s3006_s7, %s3006_s7 }
  0x2e   :  { %p3013_p8 = por %p3012_p7, %p3011_p6 }
  0x30   :  { %p3014_p9 = pnand %p3013_p8, %p3007_p5 }
  0x32   :  { %3017 = shalt.err (!%p3014_p9)
}
  0x33   :  { %s3075_s0 = smov 512   ;;  %s3076_s8 = smov 32  }
  0x34   :  { %48 = dma.hbm_to_vmem [thread:$0]  %s3599_s2, 8192, %s43_s14, [#allocation7], %s3075_s0, %s3075_s0, %s3076_s8  }
  0x35   :  { %s3077_s11 = smov [#allocation9]   ;;  %s3018_s16 = scalar_lea.hbm %s3601_s4, 2048 }
  0x36   :  { %s56_s12 = sshll.u32 %s3077_s11, 4  ;;  %p3019_p10 = scmp.ne.s32.totalorder %s3601_s4, %s3018_s16  ;;  %s57_s12 = int_to_ptr.vmem [resolvable:$true] %s56_s12 }
  0x37   :  { %p3022_p11 = scmp.lt.u32.totalorder %s3018_s16, %s3601_s4 }
  0x39   :  { %p3024_p12 = pnand %p3022_p11, %p3019_p10 }
  0x3b   :  { %3027 = shalt.err (!%p3024_p12)
}
  0x3c   :  { %s3028_s21 = scalar_lea.vmem %s57_s12, 2048  ;;  %p3033_p0 = scmp.lt.s32.totalorder %s57_s12, %s57_s12 }
  0x3d   :  { %p3029_p13 = scmp.ne.s32.totalorder %s57_s12, %s3028_s21  ;;  %p3034_p1 = scmp.lt.s32.totalorder %s3028_s21, %s3028_s21 }
  0x3f   :  { %p3035_p2 = por %p3034_p1, %p3033_p0 }
  0x41   :  { %p3036_p3 = pnand %p3035_p2, %p3029_p13 }
  0x43   :  { %3039 = shalt.err (!%p3036_p3)
}
  0x44   :  { %s3078_s2 = smov 128   ;;  %s3079_s14 = smov 8  }
  0x45   :  { %62 = dma.hbm_to_vmem [thread:$0]  %s3601_s4, 2048, %s57_s12, [#allocation10], %s3078_s2, %s3078_s2, %s3079_s14  }
  0x46   :  { %3062 = dma.done.wait [#allocation4], 64  }
  0x47   :  { %3063 = vsyncadd [#allocation4], 4294967232 }
  0x48   :  { %3064 = dma.done.wait [#allocation7], 12288  }
  0x49   :  { %3065 = vsyncadd [#allocation7], 4294955008 }
  0x4a   :  { %3066 = dma.done.wait [#allocation10], 2048  }
  0x4b   :  { %3067 = vsyncadd [#allocation10], 4294965248  ;;  %v3080_v0 = vmov 0   ;;  %v2776_v1 = vld [vmem:[#allocation6 + $0x4] ss:$16 sps:$4 sm:$0xff]   ;;  %v400_v31 = vld [vmem:[#allocation8 + $0x8] sm:$0xff] }
  0x4c   :  { %337 = vmatprep.mubr.bf16.mxu0 %v3080_v0  ;;  %378 = vmatprep.mubr.bf16.mxu1 %v3080_v0  ;;  %v2778_v2 = vld [vmem:[#allocation6 + $0xc] ss:$16 sps:$4 sm:$0xff]   ;;  %v2780_v3 = vld [vmem:[#allocation6] ss:$16 sps:$4 sm:$0xff]   ;;  %v2781_v4 = vld [vmem:[#allocation6 + $0x8] ss:$16 sps:$4 sm:$0xff]  }
  0x4d   :  { %305 = vmatprep.subr.bf16.mxu0 %v2776_v1  ;;  %346 = vmatprep.subr.bf16.mxu1 %v2778_v2  ;;  %v2782_v5 = vld [vmem:[#allocation6 + $0x24] ss:$16 sps:$4 sm:$0xff]   ;;  %v2784_v6 = vld [vmem:[#allocation6 + $0x2c] ss:$16 sps:$4 sm:$0xff]   ;;  %v2786_v7 = vld [vmem:[#allocation6 + $0x20] ss:$16 sps:$4 sm:$0xff]  }
  0x4e   :  { %306 = vmatpush1.bf16.msra.mxu0 %v2780_v3  ;;  %347 = vmatpush1.bf16.msra.mxu1 %v2781_v4  ;;  %v2787_v8 = vld [vmem:[#allocation6 + $0x28] ss:$16 sps:$4 sm:$0xff]   ;;  %v2788_v9 = vld [vmem:[#allocation6 + $0x44] ss:$16 sps:$4 sm:$0xff]   ;;  %v2790_v10 = vld [vmem:[#allocation6 + $0x4c] ss:$16 sps:$4 sm:$0xff]  }
  0x4f   :  { %307 = vmatprep.subr.bf16.mxu0 %v2782_v5  ;;  %348 = vmatprep.subr.bf16.mxu1 %v2784_v6  ;;  %v2792_v11 = vld [vmem:[#allocation6 + $0x40] ss:$16 sps:$4 sm:$0xff]   ;;  %v2793_v12 = vld [vmem:[#allocation6 + $0x48] ss:$16 sps:$4 sm:$0xff]   ;;  %v2794_v13 = vld [vmem:[#allocation6 + $0x64] ss:$16 sps:$4 sm:$0xff]  }
  0x50   :  { %v2796_v14 = vld [vmem:[#allocation6 + $0x6c] ss:$16 sps:$4 sm:$0xff]   ;;  %v2798_v15 = vld [vmem:[#allocation6 + $0x60] ss:$16 sps:$4 sm:$0xff]   ;;  %v2799_v16 = vld [vmem:[#allocation6 + $0x68] ss:$16 sps:$4 sm:$0xff]  }
  0x51   :  { %v2800_v17 = vld [vmem:[#allocation6 + $0x84] ss:$16 sps:$4 sm:$0xff]   ;;  %v2802_v18 = vld [vmem:[#allocation6 + $0x8c] ss:$16 sps:$4 sm:$0xff]   ;;  %v2804_v19 = vld [vmem:[#allocation6 + $0x80] ss:$16 sps:$4 sm:$0xff]  }
  0x52   :  { %308 = vmatpush1.bf16.msra.mxu0 %v2786_v7  ;;  %349 = vmatpush1.bf16.msra.mxu1 %v2787_v8  ;;  %v2805_v20 = vld [vmem:[#allocation6 + $0x88] ss:$16 sps:$4 sm:$0xff]   ;;  %v2806_v21 = vld [vmem:[#allocation6 + $0xa4] ss:$16 sps:$4 sm:$0xff]   ;;  %v2808_v22 = vld [vmem:[#allocation6 + $0xac] ss:$16 sps:$4 sm:$0xff]  }
  0x53   :  { %309 = vmatprep.subr.bf16.mxu0 %v2788_v9  ;;  %350 = vmatprep.subr.bf16.mxu1 %v2790_v10  ;;  %v2810_v23 = vld [vmem:[#allocation6 + $0xa0] ss:$16 sps:$4 sm:$0xff]   ;;  %v2811_v24 = vld [vmem:[#allocation6 + $0xa8] ss:$16 sps:$4 sm:$0xff]   ;;  %v2812_v25 = vld [vmem:[#allocation6 + $0xc4] ss:$16 sps:$4 sm:$0xff]  }
  0x54   :  { %v2814_v26 = vld [vmem:[#allocation6 + $0xcc] ss:$16 sps:$4 sm:$0xff]   ;;  %v2816_v27 = vld [vmem:[#allocation6 + $0xc0] ss:$16 sps:$4 sm:$0xff]   ;;  %v2817_v28 = vld [vmem:[#allocation6 + $0xc8] ss:$16 sps:$4 sm:$0xff]  }
  0x55   :  { %v2818_v29 = vld [vmem:[#allocation6 + $0xe4] ss:$16 sps:$4 sm:$0xff]   ;;  %v2820_v30 = vld [vmem:[#allocation6 + $0xec] ss:$16 sps:$4 sm:$0xff]   ;;  %v2822_v35 = vld [vmem:[#allocation6 + $0xe0] ss:$16 sps:$4 sm:$0xff]  }
  0x56   :  { %310 = vmatpush1.bf16.msra.mxu0 %v2792_v11  ;;  %351 = vmatpush1.bf16.msra.mxu1 %v2793_v12  ;;  %v404_v32 = vld [vmem:[#allocation8 + $0x28] sm:$0xff]  ;;  %v402_v33 = vld [vmem:[#allocation8 + $0x18] sm:$0xff]  ;;  %v399_v37 = vld [vmem:[#allocation8] sm:$0xff]  ;;  %v3081_v8 = vmov 0.0   ;;  %vm3083_vm0 = vmmov 0   ;;  %s3084_s25 = smov [#allocation11]  }
  0x57   :  { %311 = vmatprep.subr.bf16.mxu0 %v2794_v13  ;;  %352 = vmatprep.subr.bf16.mxu1 %v2796_v14  ;;  %v406_v34 = vld [vmem:[#allocation8 + $0x38] sm:$0xff]  ;;  %v403_v38 = vld [vmem:[#allocation8 + $0x20] sm:$0xff]  ;;  %v3168_v39 = vpack.c.bf16 %v404_v32, %v400_v31  ;;  %v401_v41 = vld [vmem:[#allocation8 + $0x10] sm:$0xff]  ;;  %s2105_s26 = sshll.u32 %s3084_s25, 4  ;;  %s2106_s26 = int_to_ptr.vmem [resolvable:$true] %s2105_s26 }
  0x58   :  { %v2823_v36 = vld [vmem:[#allocation6 + $0xe8] ss:$16 sps:$4 sm:$0xff]   ;;  %v3170_v40 = vpack.c.bf16 %v406_v34, %v402_v33  ;;  %v405_v42 = vld [vmem:[#allocation8 + $0x30] sm:$0xff]  ;;  %v112_v47 = vld [vmem:[#allocation3] sm:$0xf]  ;;  %v3172_v48 = vpack.c.bf16 %v403_v38, %v399_v37  ;;  %s3040_s27 = scalar_lea.vmem %s2106_s26, 128  ;;  %p3045_p5 = scmp.lt.s32.totalorder %s2106_s26, %s2106_s26 }
  0x59   :  { %v408_v43 = vld [vmem:[#allocation8 + $0x48] sm:$0xff]  ;;  %v410_v45 = vld [vmem:[#allocation8 + $0x58] sm:$0xff]  ;;  %v3174_v49 = vpack.c.bf16 %v405_v42, %v401_v41  ;;  %v407_v50 = vld [vmem:[#allocation8 + $0x40] sm:$0xff]  ;;  %p3041_p4 = scmp.ne.s32.totalorder %s2106_s26, %s3040_s27  ;;  %p3046_p6 = scmp.lt.s32.totalorder %s3040_s27, %s3040_s27 }
  0x5a   :  { %312 = vmatpush1.bf16.msra.mxu0 %v2798_v15  ;;  %353 = vmatpush1.bf16.msra.mxu1 %v2799_v16  ;;  %v412_v44 = vld [vmem:[#allocation8 + $0x68] sm:$0xff]  ;;  %v414_v46 = vld [vmem:[#allocation8 + $0x78] sm:$0xff]  ;;  %v411_v51 = vld [vmem:[#allocation8 + $0x60] sm:$0xff] }
  0x5b   :  { %313 = vmatprep.subr.bf16.mxu0 %v2800_v17  ;;  %354 = vmatprep.subr.bf16.mxu1 %v2802_v18  ;;  %v3178_v52 = vpack.c.bf16 %v412_v44, %v408_v43  ;;  %v3180_v53 = vpack.c.bf16 %v414_v46, %v410_v45  ;;  %v409_v54 = vld [vmem:[#allocation8 + $0x50] sm:$0xff]  ;;  %v416_v56 = vld [vmem:[#allocation8 + $0x88] sm:$0xff]  ;;  %v418_v58 = vld [vmem:[#allocation8 + $0x98] sm:$0xff]  ;;  %v3184_v60 = vpack.c.bf16 %v411_v51, %v407_v50  ;;  %p3047_p7 = por %p3046_p6, %p3045_p5 }
  0x5c   :  { %v413_v55 = vld [vmem:[#allocation8 + $0x70] sm:$0xff]  ;;  %v420_v57 = vld [vmem:[#allocation8 + $0xa8] sm:$0xff]  ;;  %v422_v59 = vld [vmem:[#allocation8 + $0xb8] sm:$0xff] }
  0x5d   :  { %v3186_v61 = vpack.c.bf16 %v413_v55, %v409_v54  ;;  %v415_v62 = vld [vmem:[#allocation8 + $0x80] sm:$0xff]  ;;  %v3190_v0 = vpack.c.bf16 %v420_v57, %v416_v56  ;;  %v3192_v1 = vpack.c.bf16 %v422_v59, %v418_v58  ;;  %v417_v2 = vld [vmem:[#allocation8 + $0x90] sm:$0xff]  ;;  %v424_v4 = vld [vmem:[#allocation8 + $0xc8] sm:$0xff]  ;;  %p3048_p8 = pnand %p3047_p7, %p3041_p4 }
  0x5e   :  { %314 = vmatpush1.bf16.msra.mxu0 %v2804_v19  ;;  %355 = vmatpush1.bf16.msra.mxu1 %v2805_v20  ;;  %v419_v63 = vld [vmem:[#allocation8 + $0xa0] sm:$0xff]  ;;  %v421_v3 = vld [vmem:[#allocation8 + $0xb0] sm:$0xff]  ;;  %v428_v5 = vld [vmem:[#allocation8 + $0xe8] sm:$0xff] }
  0x5f   :  { %315 = vmatprep.subr.bf16.mxu0 %v2806_v21  ;;  %356 = vmatprep.subr.bf16.mxu1 %v2808_v22  ;;  %v426_v6 = vld [vmem:[#allocation8 + $0xd8] sm:$0xff]  ;;  %v3198_v9 = vpack.c.bf16 %v419_v63, %v415_v62  ;;  %v3200_v10 = vpack.c.bf16 %v421_v3, %v417_v2  ;;  %v423_v11 = vld [vmem:[#allocation8 + $0xc0] sm:$0xff]  ;;  %v3204_v13 = vpack.c.bf16 %v428_v5, %v424_v4  ;;  %v425_v15 = vld [vmem:[#allocation8 + $0xd0] sm:$0xff] }
  0x60   :  { %v430_v7 = vld [vmem:[#allocation8 + $0xf8] sm:$0xff]  ;;  %v427_v12 = vld [vmem:[#allocation8 + $0xe0] sm:$0xff]  ;;  %v429_v16 = vld [vmem:[#allocation8 + $0xf0] sm:$0xff] }
  0x61   :  { %v3206_v14 = vpack.c.bf16 %v430_v7, %v426_v6  ;;  %v432_v17 = vld [vmem:[#allocation8 + $0x108] sm:$0xff]  ;;  %v434_v19 = vld [vmem:[#allocation8 + $0x118] sm:$0xff]  ;;  %v3210_v21 = vpack.c.bf16 %v427_v12, %v423_v11  ;;  %v3212_v22 = vpack.c.bf16 %v429_v16, %v425_v15  ;;  %v441_v41 = vld [vmem:[#allocation8 + $0x150] sm:$0xff] }
  0x62   :  { %316 = vmatpush1.bf16.msra.mxu0 %v2810_v23  ;;  %357 = vmatpush1.bf16.msra.mxu1 %v2811_v24  ;;  %v436_v18 = vld [vmem:[#allocation8 + $0x128] sm:$0xff]  ;;  %v438_v20 = vld [vmem:[#allocation8 + $0x138] sm:$0xff]  ;;  %v431_v23 = vld [vmem:[#allocation8 + $0x100] sm:$0xff] }
  0x63   :  { %317 = vmatprep.subr.bf16.mxu0 %v2812_v25  ;;  %358 = vmatprep.subr.bf16.mxu1 %v2814_v26  ;;  %v435_v24 = vld [vmem:[#allocation8 + $0x120] sm:$0xff]  ;;  %v3216_v25 = vpack.c.bf16 %v436_v18, %v432_v17  ;;  %v3218_v26 = vpack.c.bf16 %v438_v20, %v434_v19  ;;  %v442_v31 = vld [vmem:[#allocation8 + $0x158] sm:$0xff]  ;;  %v445_v42 = vld [vmem:[#allocation8 + $0x170] sm:$0xff]  ;;  %v84_v18 = vlaneseq }
  0x64   :  { %v446_v32 = vld [vmem:[#allocation8 + $0x178] sm:$0xff]  ;;  %v3222_v33 = vpack.c.bf16 %v435_v24, %v431_v23  ;;  %v448_v43 = vld [vmem:[#allocation8 + $0x188] sm:$0xff]  ;;  %v3236_v50 = vpack.c.bf16 %v445_v42, %v441_v41  ;;  %v447_v51 = vld [vmem:[#allocation8 + $0x180] sm:$0xff] }
  0x65   :  { %v3230_v38 = vpack.c.bf16 %v446_v32, %v442_v31  ;;  %v452_v44 = vld [vmem:[#allocation8 + $0x1a8] sm:$0xff]  ;;  %v450_v45 = vld [vmem:[#allocation8 + $0x198] sm:$0xff]  ;;  %v451_v54 = vld [vmem:[#allocation8 + $0x1a0] sm:$0xff]  ;;  %v85_v19 = vshrl.u32 %v84_v18, 7 }
  0x66   :  { %318 = vmatpush1.bf16.msra.mxu0 %v2816_v27  ;;  %359 = vmatpush1.bf16.msra.mxu1 %v2817_v28  ;;  %v433_v27 = vld [vmem:[#allocation8 + $0x110] sm:$0xff]  ;;  %v454_v46 = vld [vmem:[#allocation8 + $0x1b8] sm:$0xff]  ;;  %v3240_v55 = vpack.c.bf16 %v452_v44, %v448_v43  ;;  %v456_v59 = vld [vmem:[#allocation8 + $0x1c8] sm:$0xff]  ;;  %v3246_v3 = vpack.c.bf16 %v451_v54, %v447_v51 }
  0x67   :  { %319 = vmatprep.subr.bf16.mxu0 %v2818_v29  ;;  %360 = vmatprep.subr.bf16.mxu1 %v2820_v30  ;;  %v437_v28 = vld [vmem:[#allocation8 + $0x130] sm:$0xff]  ;;  %v440_v29 = vld [vmem:[#allocation8 + $0x148] sm:$0xff]  ;;  %v3242_v56 = vpack.c.bf16 %v454_v46, %v450_v45  ;;  %v458_v63 = vld [vmem:[#allocation8 + $0x1d8] sm:$0xff]  ;;  %v3304_v20 = vsub.s32 0, %v85_v19  ;;  %v3306_v23 = vsub.s32 2, %v85_v19 }
  0x68   :  { %v444_v30 = vld [vmem:[#allocation8 + $0x168] sm:$0xff]  ;;  %v3224_v34 = vpack.c.bf16 %v437_v28, %v433_v27  ;;  %v449_v57 = vld [vmem:[#allocation8 + $0x190] sm:$0xff]  ;;  %v462_v2 = vld [vmem:[#allocation8 + $0x1f8] sm:$0xff]  ;;  %v3311_v27 = vsub.s32 1, %v85_v19  ;;  %v3313_v28 = vsub.s32 3, %v85_v19 }
  0x69   :  { %v3228_v37 = vpack.c.bf16 %v444_v30, %v440_v29  ;;  %v453_v58 = vld [vmem:[#allocation8 + $0x1b0] sm:$0xff]  ;;  %v460_v62 = vld [vmem:[#allocation8 + $0x1e8] sm:$0xff]  ;;  %v455_v5 = vld [vmem:[#allocation8 + $0x1c0] sm:$0xff]  ;;  %v3254_v7 = vpack.c.bf16 %v462_v2, %v458_v63 }
  0x6a   :  { %320 = vmatpush1.bf16.msra.mxu0 %v2822_v35  ;;  %361 = vmatpush1.bf16.msra.mxu1 %v2823_v36  ;;  %v439_v35 = vld [vmem:[#allocation8 + $0x140] sm:$0xff]  ;;  %v3248_v4 = vpack.c.bf16 %v453_v58, %v449_v57  ;;  %v3252_v6 = vpack.c.bf16 %v460_v62, %v456_v59  ;;  %v457_v12 = vld [vmem:[#allocation8 + $0x1d0] sm:$0xff]  ;;  %v82_v24 = vld [vmem:[%s3600_s3] sm:$0xf] }
  0x6b   :  { %2226 = vmatprep.subr.bf16.mxu0 %v3168_v39  ;;  %2258 = vmatprep.subr.bf16.mxu1 %v3170_v40  ;;  %v443_v36 = vld [vmem:[#allocation8 + $0x160] sm:$0xff]  ;;  %v461_v15 = vld [vmem:[#allocation8 + $0x1f0] sm:$0xff]  ;;  %v87_v29 = vrot.slane %v82_v24, %v3304_v20  ;;  %v95_v30 = vrot.slane %v82_v24, %v3306_v23  ;;  %v91_v31 = vrot.slane %v82_v24, %v3311_v27 }
  0x6c   :  { %v459_v11 = vld [vmem:[#allocation8 + $0x1e0] sm:$0xff]  ;;  %v3260_v17 = vpack.c.bf16 %v461_v15, %v457_v12  ;;  %v99_v32 = vrot.slane %v82_v24, %v3313_v28 }
  0x6d   :  { %338 = vmatmul.mubr.bf16.vlgmr.msra.gmra.mrb[0].mxu0 %v112_v47  ;;  %379 = vmatmul.mubr.bf16.vlgmr.msra.gmra.mrb[0].mxu1 %v112_v47  ;;  %v3234_v47 = vpack.c.bf16 %v443_v36, %v439_v35  ;;  %v3258_v16 = vpack.c.bf16 %v459_v11, %v455_v5 }
  0x6e   :  { %2228 = vmatpush1.bf16.msra.mxu0 %v3172_v48  ;;  %2260 = vmatpush1.bf16.msra.mxu1 %v3174_v49 }
  0x6f   :  { %2230 = vmatprep.subr.bf16.mxu0 %v3178_v52  ;;  %2262 = vmatprep.subr.bf16.mxu1 %v3180_v53 }
  0x70   :  { %527 = vmatprep.mubr.f32.mxu0 %v3081_v8  ;;  %598 = vmatprep.mubr.f32.mxu1 %v3081_v8 }
  0x72   :  { %2232 = vmatpush1.bf16.msra.mxu0 %v3184_v60  ;;  %2264 = vmatpush1.bf16.msra.mxu1 %v3186_v61 }
  0x73   :  { %2234 = vmatprep.subr.bf16.mxu0 %v3190_v0  ;;  %2266 = vmatprep.subr.bf16.mxu1 %v3192_v1 }
  0x76   :  { %2236 = vmatpush1.bf16.msra.mxu0 %v3198_v9  ;;  %2268 = vmatpush1.bf16.msra.mxu1 %v3200_v10 }
  0x77   :  { %2238 = vmatprep.subr.bf16.mxu0 %v3204_v13  ;;  %2270 = vmatprep.subr.bf16.mxu1 %v3206_v14 }
  0x7a   :  { %2240 = vmatpush1.bf16.msra.mxu0 %v3210_v21  ;;  %2272 = vmatpush1.bf16.msra.mxu1 %v3212_v22 }
  0x7b   :  { %2242 = vmatprep.subr.bf16.mxu0 %v3216_v25  ;;  %2274 = vmatprep.subr.bf16.mxu1 %v3218_v26 }
  0x7e   :  { %2244 = vmatpush1.bf16.msra.mxu0 %v3222_v33  ;;  %2276 = vmatpush1.bf16.msra.mxu1 %v3224_v34 }
  0x7f   :  { %2246 = vmatprep.subr.bf16.mxu0 %v3228_v37  ;;  %2278 = vmatprep.subr.bf16.mxu1 %v3230_v38 }
  0x82   :  { %2248 = vmatpush1.bf16.msra.mxu0 %v3234_v47  ;;  %2280 = vmatpush1.bf16.msra.mxu1 %v3236_v50 }
  0x83   :  { %2250 = vmatprep.subr.bf16.mxu0 %v3240_v55  ;;  %2282 = vmatprep.subr.bf16.mxu1 %v3242_v56 }
  0x86   :  { %2252 = vmatpush1.bf16.msra.mxu0 %v3246_v3  ;;  %2284 = vmatpush1.bf16.msra.mxu1 %v3248_v4 }
  0x87   :  { %2254 = vmatprep.subr.bf16.mxu0 %v3252_v6  ;;  %2286 = vmatprep.subr.bf16.mxu1 %v3254_v7 }
  0x8a   :  { %2256 = vmatpush1.bf16.msra.mxu0 %v3258_v16  ;;  %2288 = vmatpush1.bf16.msra.mxu1 %v3260_v17 }
  0x8b   :  { %2290 = vmatprep.subr.bf16.mxu0 %v3168_v39  ;;  %2322 = vmatprep.subr.bf16.mxu1 %v3170_v40 }
  0x8d   :  { %528 = vmatmul.mubr.f32.vlgmr.msra.gmra.mrb[4].mxu0 %v3081_v8  ;;  %599 = vmatmul.mubr.f32.vlgmr.msra.gmra.mrb[4].mxu1 %v3081_v8 }
  0x8e   :  { %2292 = vmatpush1.bf16.msra.mxu0 %v3172_v48  ;;  %2324 = vmatpush1.bf16.msra.mxu1 %v3174_v49 }
  0x8f   :  { %2294 = vmatprep.subr.bf16.mxu0 %v3178_v52  ;;  %2326 = vmatprep.subr.bf16.mxu1 %v3180_v53 }
  0x90   :  { %720 = vmatprep.mubr.f32.mxu0 %v3081_v8  ;;  %791 = vmatprep.mubr.f32.mxu1 %v3081_v8 }
  0x92   :  { %2296 = vmatpush1.bf16.msra.mxu0 %v3184_v60  ;;  %2328 = vmatpush1.bf16.msra.mxu1 %v3186_v61 }
  0x93   :  { %2298 = vmatprep.subr.bf16.mxu0 %v3190_v0  ;;  %2330 = vmatprep.subr.bf16.mxu1 %v3192_v1 }
  0x96   :  { %2300 = vmatpush1.bf16.msra.mxu0 %v3198_v9  ;;  %2332 = vmatpush1.bf16.msra.mxu1 %v3200_v10 }
  0x97   :  { %2302 = vmatprep.subr.bf16.mxu0 %v3204_v13  ;;  %2334 = vmatprep.subr.bf16.mxu1 %v3206_v14 }
  0x9a   :  { %2304 = vmatpush1.bf16.msra.mxu0 %v3210_v21  ;;  %2336 = vmatpush1.bf16.msra.mxu1 %v3212_v22 }
  0x9b   :  { %2306 = vmatprep.subr.bf16.mxu0 %v3216_v25  ;;  %2338 = vmatprep.subr.bf16.mxu1 %v3218_v26 }
  0x9e   :  { %2308 = vmatpush1.bf16.msra.mxu0 %v3222_v33  ;;  %2340 = vmatpush1.bf16.msra.mxu1 %v3224_v34 }
  0x9f   :  { %2310 = vmatprep.subr.bf16.mxu0 %v3228_v37  ;;  %2342 = vmatprep.subr.bf16.mxu1 %v3230_v38 }
  0xa2   :  { %2312 = vmatpush1.bf16.msra.mxu0 %v3234_v47  ;;  %2344 = vmatpush1.bf16.msra.mxu1 %v3236_v50 }
  0xa3   :  { %2314 = vmatprep.subr.bf16.mxu0 %v3240_v55  ;;  %2346 = vmatprep.subr.bf16.mxu1 %v3242_v56 }
  0xa6   :  { %2316 = vmatpush1.bf16.msra.mxu0 %v3246_v3  ;;  %2348 = vmatpush1.bf16.msra.mxu1 %v3248_v4 }
  0xa7   :  { %2318 = vmatprep.subr.bf16.mxu0 %v3252_v6  ;;  %2350 = vmatprep.subr.bf16.mxu1 %v3254_v7 }
  0xaa   :  { %2320 = vmatpush1.bf16.msra.mxu0 %v3258_v16  ;;  %2352 = vmatpush1.bf16.msra.mxu1 %v3260_v17 }
  0xab   :  { %2354 = vmatprep.subr.bf16.mxu0 %v3168_v39  ;;  %2386 = vmatprep.subr.bf16.mxu1 %v3170_v40 }
 0x140   :  { %v339_v35 = vpop.f32.mrb[0].mxu0  ;;  %v380_v36 = vpop.f32.mrb[0].mxu1 }
 0x141   :  { %v387_v41 = vadd.f32 %v339_v35, %v87_v29  ;;  %v389_v42 = vadd.f32 %v380_v36, %v95_v30  ;;  %v341_v43 = vpop.f32.mrb[1].mxu0  ;;  %v382_v44 = vpop.f32.mrb[1].mxu1 }
 0x142   :  { %v388_v45 = vadd.f32 %v341_v43, %v91_v31  ;;  %v390_v46 = vadd.f32 %v382_v44, %v99_v32  ;;  %v343_v51 = vpop.f32.mrb[2].mxu0  ;;  %v384_v54 = vpop.f32.mrb[2].mxu1 }
 0x143   :  { %391 = vst [vmem:[#allocation2] sm:$0xff] %v387_v41  ;;  %393 = vst [vmem:[#allocation2 + $0x10] sm:$0xff] %v389_v42  ;;  %v344_v57 = vpop.f32.mrb[3].mxu0  ;;  %v385_v58 = vpop.f32.mrb[3].mxu1 }
 0x144   :  { %392 = vst [vmem:[#allocation2 + $0x8] sm:$0xff] %v388_v45  ;;  %394 = vst [vmem:[#allocation2 + $0x18] sm:$0xff] %v390_v46 }
 0x14b   :  { %v398_v59 = vld [vmem:[#allocation2] ss:$8 sm:$0xf] }
 0x14c   :  { %v609_v62 = vrot.slane %v398_v59, %v3304_v20  ;;  %v613_v5 = vrot.slane %v398_v59, %v3311_v27  ;;  %v617_v29 = vrot.slane %v398_v59, %v3306_v23  ;;  %v621_v31 = vrot.slane %v398_v59, %v3313_v28 }
 0x160   :  { %v529_v63 = vpop.f32.mrb[4].mxu0  ;;  %v600_v2 = vpop.f32.mrb[4].mxu1 }
 0x161   :  { %v626_v11 = vadd.f32 %v609_v62, %v529_v63  ;;  %v531_v12 = vpop.f32.mrb[5].mxu0  ;;  %v602_v15 = vpop.f32.mrb[5].mxu1  ;;  %v628_v30 = vadd.f32 %v617_v29, %v600_v2 }
 0x162   :  { %v627_v18 = vadd.f32 %v613_v5, %v531_v12  ;;  %v629_v32 = vadd.f32 %v621_v31, %v602_v15  ;;  %v655_v5 = vld [vmem:[#allocation2 + $0x1] ss:$8 sm:$0xf] }
 0x163   :  { %v2148_v19 = vmul.f32 -1.442695, %v626_v11  ;;  %v2150_v35 = vmul.f32 -1.442695, %v628_v30  ;;  %v802_v11 = vrot.slane %v655_v5, %v3304_v20 }
 0x164   :  { %v2149_v24 = vmul.f32 -1.442695, %v627_v18  ;;  %v806_v18 = vrot.slane %v655_v5, %v3311_v27 }
 0x165   :  { %2824 = vpow2.f32 %v2148_v19 }
 0x166   :  { %2826 = vpow2.f32 %v2149_v24 }
 0x167   :  { %2828 = vtanh.f32 %v629_v32 }
 0x168   :  { %2830 = vpow2.f32 %v2150_v35  ;;  %v810_v35 = vrot.slane %v655_v5, %v3306_v23 }
 0x16f   :  { %v2825_v36 = vpop.eup %2824 }
 0x170   :  { %v639_v41 = vadd.f32 1.0, %v2825_v36  ;;  %v2827_v42 = vpop.eup %2826 }
 0x171   :  { %v640_v43 = vadd.f32 1.0, %v2827_v42  ;;  %v2829_v44 = vpop.eup %2828 }
 0x172   :  { %2832 = vrcp.f32 %v639_v41  ;;  %v2831_v45 = vpop.eup %2830  ;;  %v814_v41 = vrot.slane %v655_v5, %v3313_v28 }
 0x173   :  { %2834 = vrcp.f32 %v640_v43  ;;  %v641_v57 = vadd.f32 1.0, %v2831_v45 }
 0x175   :  { %2836 = vrcp.f32 %v641_v57 }
 0x17c   :  { %v2833_v46 = vpop.eup %2832 }
 0x17d   :  { %v650_v51 = vmul.f32 %v2833_v46, %v2829_v44  ;;  %v2835_v54 = vpop.eup %2834 }
 0x17e   :  { %v649_v58 = vmul.f32 0.0, %v2835_v54 }
 0x17f   :  { %v2837_v59 = vpop.eup %2836 }
 0x180   :  { %v3323_v62 = vadd.f32 %v650_v51, %v649_v58 }
 0x182   :  { %2838 = vtanh.f32 %v3323_v62 }
 0x18c   :  { %v2839_v63 = vpop.eup %2838 }
 0x18d   :  { %v653_v2 = vmul.f32 %v2839_v63, %v2837_v59 }
 0x18f   :  { %721 = vmatmul.mubr.f32.vlgmr.msra.gmra.mrb[6].mxu0 %v653_v2  ;;  %792 = vmatmul.mubr.f32.vlgmr.msra.gmra.mrb[6].mxu1 %v653_v2 }
 0x190   :  { %2356 = vmatpush1.bf16.msra.mxu0 %v3172_v48  ;;  %2388 = vmatpush1.bf16.msra.mxu1 %v3174_v49 }
 0x191   :  { %2358 = vmatprep.subr.bf16.mxu0 %v3178_v52  ;;  %2390 = vmatprep.subr.bf16.mxu1 %v3180_v53 }
 0x192   :  { %913 = vmatprep.mubr.f32.mxu0 %v3081_v8  ;;  %984 = vmatprep.mubr.f32.mxu1 %v3081_v8 }
 0x194   :  { %2360 = vmatpush1.bf16.msra.mxu0 %v3184_v60  ;;  %2392 = vmatpush1.bf16.msra.mxu1 %v3186_v61 }
 0x195   :  { %2362 = vmatprep.subr.bf16.mxu0 %v3190_v0  ;;  %2394 = vmatprep.subr.bf16.mxu1 %v3192_v1 }
 0x198   :  { %2364 = vmatpush1.bf16.msra.mxu0 %v3198_v9  ;;  %2396 = vmatpush1.bf16.msra.mxu1 %v3200_v10 }
 0x199   :  { %2366 = vmatprep.subr.bf16.mxu0 %v3204_v13  ;;  %2398 = vmatprep.subr.bf16.mxu1 %v3206_v14 }
 0x19c   :  { %2368 = vmatpush1.bf16.msra.mxu0 %v3210_v21  ;;  %2400 = vmatpush1.bf16.msra.mxu1 %v3212_v22 }
 0x19d   :  { %2370 = vmatprep.subr.bf16.mxu0 %v3216_v25  ;;  %2402 = vmatprep.subr.bf16.mxu1 %v3218_v26 }
 0x1a0   :  { %2372 = vmatpush1.bf16.msra.mxu0 %v3222_v33  ;;  %2404 = vmatpush1.bf16.msra.mxu1 %v3224_v34 }
 0x1a1   :  { %2374 = vmatprep.subr.bf16.mxu0 %v3228_v37  ;;  %2406 = vmatprep.subr.bf16.mxu1 %v3230_v38 }
 0x1a4   :  { %2376 = vmatpush1.bf16.msra.mxu0 %v3234_v47  ;;  %2408 = vmatpush1.bf16.msra.mxu1 %v3236_v50 }
 0x1a5   :  { %2378 = vmatprep.subr.bf16.mxu0 %v3240_v55  ;;  %2410 = vmatprep.subr.bf16.mxu1 %v3242_v56 }
 0x1a8   :  { %2380 = vmatpush1.bf16.msra.mxu0 %v3246_v3  ;;  %2412 = vmatpush1.bf16.msra.mxu1 %v3248_v4 }
 0x1a9   :  { %2382 = vmatprep.subr.bf16.mxu0 %v3252_v6  ;;  %2414 = vmatprep.subr.bf16.mxu1 %v3254_v7 }
 0x1ac   :  { %2384 = vmatpush1.bf16.msra.mxu0 %v3258_v16  ;;  %2416 = vmatpush1.bf16.msra.mxu1 %v3260_v17 }
 0x1ad   :  { %2418 = vmatprep.subr.bf16.mxu0 %v3168_v39  ;;  %2450 = vmatprep.subr.bf16.mxu1 %v3170_v40 }
 0x262   :  { %v722_v12 = vpop.f32.mrb[6].mxu0  ;;  %v793_v15 = vpop.f32.mrb[6].mxu1 }
 0x263   :  { %v819_v19 = vadd.f32 %v802_v11, %v722_v12  ;;  %v724_v24 = vpop.f32.mrb[7].mxu0  ;;  %v795_v29 = vpop.f32.mrb[7].mxu1  ;;  %v821_v36 = vadd.f32 %v810_v35, %v793_v15 }
 0x264   :  { %v820_v30 = vadd.f32 %v806_v18, %v724_v24  ;;  %v822_v42 = vadd.f32 %v814_v41, %v795_v29 }
 0x265   :  { %v2151_v31 = vmul.f32 -1.442695, %v819_v19  ;;  %v2153_v43 = vmul.f32 -1.442695, %v821_v36 }
 0x266   :  { %v2152_v32 = vmul.f32 -1.442695, %v820_v30 }
 0x267   :  { %2840 = vpow2.f32 %v2151_v31 }
 0x268   :  { %2842 = vpow2.f32 %v2152_v32 }
 0x269   :  { %2844 = vtanh.f32 %v822_v42 }
 0x26a   :  { %2846 = vpow2.f32 %v2153_v43 }
 0x271   :  { %v2841_v44 = vpop.eup %2840 }
 0x272   :  { %v832_v45 = vadd.f32 1.0, %v2841_v44  ;;  %v2843_v46 = vpop.eup %2842 }
 0x273   :  { %v833_v51 = vadd.f32 1.0, %v2843_v46  ;;  %v2845_v54 = vpop.eup %2844 }
 0x274   :  { %2848 = vrcp.f32 %v832_v45  ;;  %v2847_v57 = vpop.eup %2846 }
 0x275   :  { %2850 = vrcp.f32 %v833_v51  ;;  %v834_v2 = vadd.f32 1.0, %v2847_v57 }
 0x277   :  { %2852 = vrcp.f32 %v834_v2 }
 0x27e   :  { %v2849_v58 = vpop.eup %2848 }
 0x27f   :  { %v843_v59 = vmul.f32 %v2849_v58, %v2845_v54  ;;  %v2851_v63 = vpop.eup %2850 }
 0x280   :  { %v842_v11 = vmul.f32 %v2851_v63, %v3323_v62  ;;  %v848_v62 = vld [vmem:[#allocation2 + $0x2] ss:$8 sm:$0xf] }
 0x281   :  { %v2853_v5 = vpop.eup %2852  ;;  %v995_v19 = vrot.slane %v848_v62, %v3304_v20  ;;  %v999_v30 = vrot.slane %v848_v62, %v3311_v27  ;;  %v1003_v43 = vrot.slane %v848_v62, %v3306_v23  ;;  %v1007_v45 = vrot.slane %v848_v62, %v3313_v28 }
 0x282   :  { %v3365_v12 = vadd.f32 %v843_v59, %v842_v11 }
 0x284   :  { %2854 = vtanh.f32 %v3365_v12 }
 0x28e   :  { %v2855_v15 = vpop.eup %2854 }
 0x28f   :  { %v846_v18 = vmul.f32 %v2855_v15, %v2853_v5 }
 0x291   :  { %914 = vmatmul.mubr.f32.vlgmr.msra.gmra.mrb[8].mxu0 %v846_v18  ;;  %985 = vmatmul.mubr.f32.vlgmr.msra.gmra.mrb[8].mxu1 %v846_v18 }
 0x292   :  { %2420 = vmatpush1.bf16.msra.mxu0 %v3172_v48  ;;  %2452 = vmatpush1.bf16.msra.mxu1 %v3174_v49 }
 0x293   :  { %2422 = vmatprep.subr.bf16.mxu0 %v3178_v52  ;;  %2454 = vmatprep.subr.bf16.mxu1 %v3180_v53 }
 0x294   :  { %1106 = vmatprep.mubr.f32.mxu0 %v3081_v8  ;;  %1177 = vmatprep.mubr.f32.mxu1 %v3081_v8 }
 0x296   :  { %2424 = vmatpush1.bf16.msra.mxu0 %v3184_v60  ;;  %2456 = vmatpush1.bf16.msra.mxu1 %v3186_v61 }
 0x297   :  { %2426 = vmatprep.subr.bf16.mxu0 %v3190_v0  ;;  %2458 = vmatprep.subr.bf16.mxu1 %v3192_v1 }
 0x29a   :  { %2428 = vmatpush1.bf16.msra.mxu0 %v3198_v9  ;;  %2460 = vmatpush1.bf16.msra.mxu1 %v3200_v10 }
 0x29b   :  { %2430 = vmatprep.subr.bf16.mxu0 %v3204_v13  ;;  %2462 = vmatprep.subr.bf16.mxu1 %v3206_v14 }
 0x29e   :  { %2432 = vmatpush1.bf16.msra.mxu0 %v3210_v21  ;;  %2464 = vmatpush1.bf16.msra.mxu1 %v3212_v22 }
 0x29f   :  { %2434 = vmatprep.subr.bf16.mxu0 %v3216_v25  ;;  %2466 = vmatprep.subr.bf16.mxu1 %v3218_v26 }
 0x2a2   :  { %2436 = vmatpush1.bf16.msra.mxu0 %v3222_v33  ;;  %2468 = vmatpush1.bf16.msra.mxu1 %v3224_v34 }
 0x2a3   :  { %2438 = vmatprep.subr.bf16.mxu0 %v3228_v37  ;;  %2470 = vmatprep.subr.bf16.mxu1 %v3230_v38 }
 0x2a6   :  { %2440 = vmatpush1.bf16.msra.mxu0 %v3234_v47  ;;  %2472 = vmatpush1.bf16.msra.mxu1 %v3236_v50 }
 0x2a7   :  { %2442 = vmatprep.subr.bf16.mxu0 %v3240_v55  ;;  %2474 = vmatprep.subr.bf16.mxu1 %v3242_v56 }
 0x2aa   :  { %2444 = vmatpush1.bf16.msra.mxu0 %v3246_v3  ;;  %2476 = vmatpush1.bf16.msra.mxu1 %v3248_v4 }
 0x2ab   :  { %2446 = vmatprep.subr.bf16.mxu0 %v3252_v6  ;;  %2478 = vmatprep.subr.bf16.mxu1 %v3254_v7 }
 0x2ae   :  { %2448 = vmatpush1.bf16.msra.mxu0 %v3258_v16  ;;  %2480 = vmatpush1.bf16.msra.mxu1 %v3260_v17 }
 0x2af   :  { %2482 = vmatprep.subr.bf16.mxu0 %v3168_v39  ;;  %2514 = vmatprep.subr.bf16.mxu1 %v3170_v40 }
 0x364   :  { %v915_v24 = vpop.f32.mrb[8].mxu0  ;;  %v986_v29 = vpop.f32.mrb[8].mxu1 }
 0x365   :  { %v1012_v31 = vadd.f32 %v995_v19, %v915_v24  ;;  %v917_v32 = vpop.f32.mrb[9].mxu0  ;;  %v988_v35 = vpop.f32.mrb[9].mxu1  ;;  %v1014_v44 = vadd.f32 %v1003_v43, %v986_v29 }
 0x366   :  { %v1013_v36 = vadd.f32 %v999_v30, %v917_v32  ;;  %v1015_v46 = vadd.f32 %v1007_v45, %v988_v35 }
 0x367   :  { %v2154_v41 = vmul.f32 -1.442695, %v1012_v31  ;;  %v2156_v51 = vmul.f32 -1.442695, %v1014_v44 }
 0x368   :  { %v2155_v42 = vmul.f32 -1.442695, %v1013_v36 }
 0x369   :  { %2856 = vpow2.f32 %v2154_v41 }
 0x36a   :  { %2858 = vpow2.f32 %v2155_v42 }
 0x36b   :  { %2860 = vtanh.f32 %v1015_v46 }
 0x36c   :  { %2862 = vpow2.f32 %v2156_v51 }
 0x373   :  { %v2857_v54 = vpop.eup %2856 }
 0x374   :  { %v1025_v57 = vadd.f32 1.0, %v2857_v54  ;;  %v2859_v58 = vpop.eup %2858 }
 0x375   :  { %v1026_v59 = vadd.f32 1.0, %v2859_v58  ;;  %v2861_v63 = vpop.eup %2860 }
 0x376   :  { %2864 = vrcp.f32 %v1025_v57  ;;  %v2863_v2 = vpop.eup %2862 }
 0x377   :  { %2866 = vrcp.f32 %v1026_v59  ;;  %v1027_v18 = vadd.f32 1.0, %v2863_v2 }
 0x379   :  { %2868 = vrcp.f32 %v1027_v18 }
 0x380   :  { %v2865_v11 = vpop.eup %2864 }
 0x381   :  { %v1036_v5 = vmul.f32 %v2865_v11, %v2861_v63  ;;  %v2867_v15 = vpop.eup %2866 }
 0x382   :  { %v1035_v19 = vmul.f32 %v2867_v15, %v3365_v12  ;;  %v1041_v12 = vld [vmem:[#allocation2 + $0x3] ss:$8 sm:$0xf] }
 0x383   :  { %v2869_v62 = vpop.eup %2868  ;;  %v1188_v31 = vrot.slane %v1041_v12, %v3304_v20  ;;  %v1192_v36 = vrot.slane %v1041_v12, %v3311_v27  ;;  %v1196_v51 = vrot.slane %v1041_v12, %v3306_v23  ;;  %v1200_v57 = vrot.slane %v1041_v12, %v3313_v28 }
 0x384   :  { %v3407_v24 = vadd.f32 %v1036_v5, %v1035_v19 }
 0x386   :  { %2870 = vtanh.f32 %v3407_v24 }
 0x390   :  { %v2871_v29 = vpop.eup %2870 }
 0x391   :  { %v1039_v30 = vmul.f32 %v2871_v29, %v2869_v62 }
 0x393   :  { %1107 = vmatmul.mubr.f32.vlgmr.msra.gmra.mrb[10].mxu0 %v1039_v30  ;;  %1178 = vmatmul.mubr.f32.vlgmr.msra.gmra.mrb[10].mxu1 %v1039_v30 }
 0x394   :  { %2484 = vmatpush1.bf16.msra.mxu0 %v3172_v48  ;;  %2516 = vmatpush1.bf16.msra.mxu1 %v3174_v49 }
 0x395   :  { %2486 = vmatprep.subr.bf16.mxu0 %v3178_v52  ;;  %2518 = vmatprep.subr.bf16.mxu1 %v3180_v53 }
 0x396   :  { %1299 = vmatprep.mubr.f32.mxu0 %v3081_v8  ;;  %1370 = vmatprep.mubr.f32.mxu1 %v3081_v8 }
 0x398   :  { %2488 = vmatpush1.bf16.msra.mxu0 %v3184_v60  ;;  %2520 = vmatpush1.bf16.msra.mxu1 %v3186_v61 }
 0x399   :  { %2490 = vmatprep.subr.bf16.mxu0 %v3190_v0  ;;  %2522 = vmatprep.subr.bf16.mxu1 %v3192_v1 }
 0x39c   :  { %2492 = vmatpush1.bf16.msra.mxu0 %v3198_v9  ;;  %2524 = vmatpush1.bf16.msra.mxu1 %v3200_v10 }
 0x39d   :  { %2494 = vmatprep.subr.bf16.mxu0 %v3204_v13  ;;  %2526 = vmatprep.subr.bf16.mxu1 %v3206_v14 }
 0x3a0   :  { %2496 = vmatpush1.bf16.msra.mxu0 %v3210_v21  ;;  %2528 = vmatpush1.bf16.msra.mxu1 %v3212_v22 }
 0x3a1   :  { %2498 = vmatprep.subr.bf16.mxu0 %v3216_v25  ;;  %2530 = vmatprep.subr.bf16.mxu1 %v3218_v26 }
 0x3a4   :  { %2500 = vmatpush1.bf16.msra.mxu0 %v3222_v33  ;;  %2532 = vmatpush1.bf16.msra.mxu1 %v3224_v34 }
 0x3a5   :  { %2502 = vmatprep.subr.bf16.mxu0 %v3228_v37  ;;  %2534 = vmatprep.subr.bf16.mxu1 %v3230_v38 }
 0x3a8   :  { %2504 = vmatpush1.bf16.msra.mxu0 %v3234_v47  ;;  %2536 = vmatpush1.bf16.msra.mxu1 %v3236_v50 }
 0x3a9   :  { %2506 = vmatprep.subr.bf16.mxu0 %v3240_v55  ;;  %2538 = vmatprep.subr.bf16.mxu1 %v3242_v56 }
 0x3ac   :  { %2508 = vmatpush1.bf16.msra.mxu0 %v3246_v3  ;;  %2540 = vmatpush1.bf16.msra.mxu1 %v3248_v4 }
 0x3ad   :  { %2510 = vmatprep.subr.bf16.mxu0 %v3252_v6  ;;  %2542 = vmatprep.subr.bf16.mxu1 %v3254_v7 }
 0x3b0   :  { %2512 = vmatpush1.bf16.msra.mxu0 %v3258_v16  ;;  %2544 = vmatpush1.bf16.msra.mxu1 %v3260_v17 }
 0x3b1   :  { %2546 = vmatprep.subr.bf16.mxu0 %v3168_v39  ;;  %2578 = vmatprep.subr.bf16.mxu1 %v3170_v40 }
 0x466   :  { %v1108_v32 = vpop.f32.mrb[10].mxu0  ;;  %v1179_v35 = vpop.f32.mrb[10].mxu1 }
 0x467   :  { %v1205_v41 = vadd.f32 %v1188_v31, %v1108_v32  ;;  %v1110_v42 = vpop.f32.mrb[11].mxu0  ;;  %v1181_v43 = vpop.f32.mrb[11].mxu1  ;;  %v1207_v54 = vadd.f32 %v1196_v51, %v1179_v35 }
 0x468   :  { %v1206_v44 = vadd.f32 %v1192_v36, %v1110_v42  ;;  %v1208_v58 = vadd.f32 %v1200_v57, %v1181_v43 }
 0x469   :  { %v2157_v45 = vmul.f32 -1.442695, %v1205_v41  ;;  %v2159_v59 = vmul.f32 -1.442695, %v1207_v54 }
 0x46a   :  { %v2158_v46 = vmul.f32 -1.442695, %v1206_v44 }
 0x46b   :  { %2872 = vpow2.f32 %v2157_v45 }
 0x46c   :  { %2874 = vpow2.f32 %v2158_v46 }
 0x46d   :  { %2876 = vtanh.f32 %v1208_v58 }
 0x46e   :  { %2878 = vpow2.f32 %v2159_v59 }
 0x475   :  { %v2873_v63 = vpop.eup %2872 }
 0x476   :  { %v1218_v2 = vadd.f32 1.0, %v2873_v63  ;;  %v2875_v11 = vpop.eup %2874 }
 0x477   :  { %v1219_v5 = vadd.f32 1.0, %v2875_v11  ;;  %v2877_v15 = vpop.eup %2876 }
 0x478   :  { %2880 = vrcp.f32 %v1218_v2  ;;  %v2879_v18 = vpop.eup %2878 }
 0x479   :  { %2882 = vrcp.f32 %v1219_v5  ;;  %v1220_v30 = vadd.f32 1.0, %v2879_v18 }
 0x47b   :  { %2884 = vrcp.f32 %v1220_v30 }
 0x482   :  { %v2881_v19 = vpop.eup %2880 }
 0x483   :  { %v1229_v62 = vmul.f32 %v2881_v19, %v2877_v15  ;;  %v2883_v29 = vpop.eup %2882 }
 0x484   :  { %v1228_v31 = vmul.f32 %v2883_v29, %v3407_v24  ;;  %v1234_v24 = vld [vmem:[#allocation2 + $0x4] ss:$8 sm:$0xf] }
 0x485   :  { %v2885_v12 = vpop.eup %2884  ;;  %v1381_v41 = vrot.slane %v1234_v24, %v3304_v20  ;;  %v1385_v44 = vrot.slane %v1234_v24, %v3311_v27  ;;  %v1389_v59 = vrot.slane %v1234_v24, %v3306_v23  ;;  %v1393_v2 = vrot.slane %v1234_v24, %v3313_v28 }
 0x486   :  { %v3449_v32 = vadd.f32 %v1229_v62, %v1228_v31 }
 0x488   :  { %2886 = vtanh.f32 %v3449_v32 }
 0x492   :  { %v2887_v35 = vpop.eup %2886 }
 0x493   :  { %v1232_v36 = vmul.f32 %v2887_v35, %v2885_v12 }
 0x495   :  { %1300 = vmatmul.mubr.f32.vlgmr.msra.gmra.mrb[12].mxu0 %v1232_v36  ;;  %1371 = vmatmul.mubr.f32.vlgmr.msra.gmra.mrb[12].mxu1 %v1232_v36 }
 0x496   :  { %2548 = vmatpush1.bf16.msra.mxu0 %v3172_v48  ;;  %2580 = vmatpush1.bf16.msra.mxu1 %v3174_v49 }
 0x497   :  { %2550 = vmatprep.subr.bf16.mxu0 %v3178_v52  ;;  %2582 = vmatprep.subr.bf16.mxu1 %v3180_v53 }
 0x498   :  { %1492 = vmatprep.mubr.f32.mxu0 %v3081_v8  ;;  %1563 = vmatprep.mubr.f32.mxu1 %v3081_v8 }
 0x49a   :  { %2552 = vmatpush1.bf16.msra.mxu0 %v3184_v60  ;;  %2584 = vmatpush1.bf16.msra.mxu1 %v3186_v61 }
 0x49b   :  { %2554 = vmatprep.subr.bf16.mxu0 %v3190_v0  ;;  %2586 = vmatprep.subr.bf16.mxu1 %v3192_v1 }
 0x49e   :  { %2556 = vmatpush1.bf16.msra.mxu0 %v3198_v9  ;;  %2588 = vmatpush1.bf16.msra.mxu1 %v3200_v10 }
 0x49f   :  { %2558 = vmatprep.subr.bf16.mxu0 %v3204_v13  ;;  %2590 = vmatprep.subr.bf16.mxu1 %v3206_v14 }
 0x4a2   :  { %2560 = vmatpush1.bf16.msra.mxu0 %v3210_v21  ;;  %2592 = vmatpush1.bf16.msra.mxu1 %v3212_v22 }
 0x4a3   :  { %2562 = vmatprep.subr.bf16.mxu0 %v3216_v25  ;;  %2594 = vmatprep.subr.bf16.mxu1 %v3218_v26 }
 0x4a6   :  { %2564 = vmatpush1.bf16.msra.mxu0 %v3222_v33  ;;  %2596 = vmatpush1.bf16.msra.mxu1 %v3224_v34 }
 0x4a7   :  { %2566 = vmatprep.subr.bf16.mxu0 %v3228_v37  ;;  %2598 = vmatprep.subr.bf16.mxu1 %v3230_v38 }
 0x4aa   :  { %2568 = vmatpush1.bf16.msra.mxu0 %v3234_v47  ;;  %2600 = vmatpush1.bf16.msra.mxu1 %v3236_v50 }
 0x4ab   :  { %2570 = vmatprep.subr.bf16.mxu0 %v3240_v55  ;;  %2602 = vmatprep.subr.bf16.mxu1 %v3242_v56 }
 0x4ae   :  { %2572 = vmatpush1.bf16.msra.mxu0 %v3246_v3  ;;  %2604 = vmatpush1.bf16.msra.mxu1 %v3248_v4 }
 0x4af   :  { %2574 = vmatprep.subr.bf16.mxu0 %v3252_v6  ;;  %2606 = vmatprep.subr.bf16.mxu1 %v3254_v7 }
 0x4b2   :  { %2576 = vmatpush1.bf16.msra.mxu0 %v3258_v16  ;;  %2608 = vmatpush1.bf16.msra.mxu1 %v3260_v17 }
 0x4b3   :  { %2610 = vmatprep.subr.bf16.mxu0 %v3168_v39  ;;  %2642 = vmatprep.subr.bf16.mxu1 %v3170_v40 }
 0x568   :  { %v1301_v42 = vpop.f32.mrb[12].mxu0  ;;  %v1372_v43 = vpop.f32.mrb[12].mxu1 }
 0x569   :  { %v1398_v45 = vadd.f32 %v1381_v41, %v1301_v42  ;;  %v1303_v46 = vpop.f32.mrb[13].mxu0  ;;  %v1374_v51 = vpop.f32.mrb[13].mxu1  ;;  %v1400_v63 = vadd.f32 %v1389_v59, %v1372_v43 }
 0x56a   :  { %v1399_v54 = vadd.f32 %v1385_v44, %v1303_v46  ;;  %v1401_v11 = vadd.f32 %v1393_v2, %v1374_v51 }
 0x56b   :  { %v2160_v57 = vmul.f32 -1.442695, %v1398_v45  ;;  %v2162_v5 = vmul.f32 -1.442695, %v1400_v63 }
 0x56c   :  { %v2161_v58 = vmul.f32 -1.442695, %v1399_v54 }
 0x56d   :  { %2888 = vpow2.f32 %v2160_v57 }
 0x56e   :  { %2890 = vpow2.f32 %v2161_v58 }
 0x56f   :  { %2892 = vtanh.f32 %v1401_v11 }
 0x570   :  { %2894 = vpow2.f32 %v2162_v5 }
 0x577   :  { %v2889_v15 = vpop.eup %2888 }
 0x578   :  { %v1411_v18 = vadd.f32 1.0, %v2889_v15  ;;  %v2891_v19 = vpop.eup %2890 }
 0x579   :  { %v1412_v62 = vadd.f32 1.0, %v2891_v19  ;;  %v2893_v29 = vpop.eup %2892 }
 0x57a   :  { %2896 = vrcp.f32 %v1411_v18  ;;  %v2895_v30 = vpop.eup %2894 }
 0x57b   :  { %2898 = vrcp.f32 %v1412_v62  ;;  %v1413_v36 = vadd.f32 1.0, %v2895_v30 }
 0x57d   :  { %2900 = vrcp.f32 %v1413_v36 }
 0x584   :  { %v2897_v31 = vpop.eup %2896 }
 0x585   :  { %v1422_v12 = vmul.f32 %v2897_v31, %v2893_v29  ;;  %v2899_v35 = vpop.eup %2898 }
 0x586   :  { %v1421_v41 = vmul.f32 %v2899_v35, %v3449_v32  ;;  %v1427_v32 = vld [vmem:[#allocation2 + $0x5] ss:$8 sm:$0xf] }
 0x587   :  { %v2901_v24 = vpop.eup %2900  ;;  %v1574_v45 = vrot.slane %v1427_v32, %v3304_v20  ;;  %v1578_v54 = vrot.slane %v1427_v32, %v3311_v27  ;;  %v1582_v5 = vrot.slane %v1427_v32, %v3306_v23 }
 0x588   :  { %v3491_v42 = vadd.f32 %v1422_v12, %v1421_v41 }
 0x58a   :  { %2902 = vtanh.f32 %v3491_v42 }
 0x594   :  { %v2903_v43 = vpop.eup %2902 }
 0x595   :  { %v1425_v44 = vmul.f32 %v2903_v43, %v2901_v24 }
 0x597   :  { %1493 = vmatmul.mubr.f32.vlgmr.msra.gmra.mrb[14].mxu0 %v1425_v44  ;;  %1564 = vmatmul.mubr.f32.vlgmr.msra.gmra.mrb[14].mxu1 %v1425_v44 }
 0x598   :  { %2612 = vmatpush1.bf16.msra.mxu0 %v3172_v48  ;;  %2644 = vmatpush1.bf16.msra.mxu1 %v3174_v49 }
 0x599   :  { %2614 = vmatprep.subr.bf16.mxu0 %v3178_v52  ;;  %2646 = vmatprep.subr.bf16.mxu1 %v3180_v53 }
 0x59a   :  { %1685 = vmatprep.mubr.f32.mxu0 %v3081_v8  ;;  %1756 = vmatprep.mubr.f32.mxu1 %v3081_v8 }
 0x59c   :  { %2616 = vmatpush1.bf16.msra.mxu0 %v3184_v60  ;;  %2648 = vmatpush1.bf16.msra.mxu1 %v3186_v61 }
 0x59d   :  { %2618 = vmatprep.subr.bf16.mxu0 %v3190_v0  ;;  %2650 = vmatprep.subr.bf16.mxu1 %v3192_v1 }
 0x5a0   :  { %2620 = vmatpush1.bf16.msra.mxu0 %v3198_v9  ;;  %2652 = vmatpush1.bf16.msra.mxu1 %v3200_v10 }
 0x5a1   :  { %2622 = vmatprep.subr.bf16.mxu0 %v3204_v13  ;;  %2654 = vmatprep.subr.bf16.mxu1 %v3206_v14 }
 0x5a4   :  { %2624 = vmatpush1.bf16.msra.mxu0 %v3210_v21  ;;  %2656 = vmatpush1.bf16.msra.mxu1 %v3212_v22 }
 0x5a5   :  { %2626 = vmatprep.subr.bf16.mxu0 %v3216_v25  ;;  %2658 = vmatprep.subr.bf16.mxu1 %v3218_v26 }
 0x5a8   :  { %2628 = vmatpush1.bf16.msra.mxu0 %v3222_v33  ;;  %2660 = vmatpush1.bf16.msra.mxu1 %v3224_v34 }
 0x5a9   :  { %2630 = vmatprep.subr.bf16.mxu0 %v3228_v37  ;;  %2662 = vmatprep.subr.bf16.mxu1 %v3230_v38 }
 0x5ac   :  { %2632 = vmatpush1.bf16.msra.mxu0 %v3234_v47  ;;  %2664 = vmatpush1.bf16.msra.mxu1 %v3236_v50 }
 0x5ad   :  { %2634 = vmatprep.subr.bf16.mxu0 %v3240_v55  ;;  %2666 = vmatprep.subr.bf16.mxu1 %v3242_v56 }
 0x5b0   :  { %2636 = vmatpush1.bf16.msra.mxu0 %v3246_v3  ;;  %2668 = vmatpush1.bf16.msra.mxu1 %v3248_v4 }
 0x5b1   :  { %2638 = vmatprep.subr.bf16.mxu0 %v3252_v6  ;;  %2670 = vmatprep.subr.bf16.mxu1 %v3254_v7 }
 0x5b4   :  { %2640 = vmatpush1.bf16.msra.mxu0 %v3258_v16  ;;  %2672 = vmatpush1.bf16.msra.mxu1 %v3260_v17 }
 0x5b5   :  { %2674 = vmatprep.subr.bf16.mxu0 %v3168_v39  ;;  %2706 = vmatprep.subr.bf16.mxu1 %v3170_v40  ;;  %v1586_v40 = vrot.slane %v1427_v32, %v3313_v28 }
 0x66a   :  { %v1494_v46 = vpop.f32.mrb[14].mxu0  ;;  %v1565_v51 = vpop.f32.mrb[14].mxu1 }
 0x66b   :  { %v1591_v57 = vadd.f32 %v1574_v45, %v1494_v46  ;;  %v1496_v58 = vpop.f32.mrb[15].mxu0  ;;  %v1567_v59 = vpop.f32.mrb[15].mxu1  ;;  %v1593_v39 = vadd.f32 %v1582_v5, %v1565_v51  ;;  %v2005_v51 = vld [vmem:[#allocation9] sm:$0xff]  ;;  %v2010_v5 = vld [vmem:[#allocation9 + $0x28] sm:$0xff] }
 0x66c   :  { %v1592_v63 = vadd.f32 %v1578_v54, %v1496_v58  ;;  %v1594_v15 = vadd.f32 %v1586_v40, %v1567_v59  ;;  %v2006_v54 = vld [vmem:[#allocation9 + $0x8] sm:$0xff]  ;;  %v3082_v58 = vmov 0.0|0.0   ;;  %v2007_v59 = vld [vmem:[#allocation9 + $0x10] sm:$0xff] }
 0x66d   :  { %v2163_v2 = vmul.f32 -1.442695, %v1591_v57  ;;  %v2165_v18 = vmul.f32 -1.442695, %v1593_v39  ;;  %v2738_v57 = vpack.c.bf16 %v2006_v54, %v2005_v51  ;;  %v2011_v40 = vld [vmem:[#allocation9 + $0x30] sm:$0xff] }
 0x66e   :  { %v2164_v11 = vmul.f32 -1.442695, %v1592_v63  ;;  %v2008_v63 = vld [vmem:[#allocation9 + $0x18] sm:$0xff] }
 0x66f   :  { %2904 = vpow2.f32 %v2163_v2  ;;  %v2741_v2 = vpack.c.bf16 %v2008_v63, %v2007_v59 }
 0x670   :  { %2906 = vpow2.f32 %v2164_v11  ;;  %v2009_v11 = vld [vmem:[#allocation9 + $0x20] sm:$0xff] }
 0x671   :  { %2908 = vtanh.f32 %v1594_v15  ;;  %v2744_v39 = vpack.c.bf16 %v2010_v5, %v2009_v11  ;;  %v2012_v15 = vld [vmem:[#allocation9 + $0x38] sm:$0xff] }
 0x672   :  { %2910 = vpow2.f32 %v2165_v18  ;;  %v2747_v18 = vpack.c.bf16 %v2012_v15, %v2011_v40 }
 0x679   :  { %v2905_v19 = vpop.eup %2904 }
 0x67a   :  { %v1604_v62 = vadd.f32 1.0, %v2905_v19  ;;  %v2907_v29 = vpop.eup %2906  ;;  %v2013_v19 = vld [vmem:[#allocation9 + $0x40] sm:$0xff] }
 0x67b   :  { %v1605_v30 = vadd.f32 1.0, %v2907_v29  ;;  %v2909_v31 = vpop.eup %2908 }
 0x67c   :  { %2912 = vrcp.f32 %v1604_v62  ;;  %v2911_v12 = vpop.eup %2910  ;;  %v2014_v62 = vld [vmem:[#allocation9 + $0x48] sm:$0xff] }
 0x67d   :  { %2914 = vrcp.f32 %v1605_v30  ;;  %v1606_v24 = vadd.f32 1.0, %v2911_v12  ;;  %v2750_v29 = vpack.c.bf16 %v2014_v62, %v2013_v19  ;;  %v2015_v30 = vld [vmem:[#allocation9 + $0x50] sm:$0xff] }
 0x67f   :  { %2916 = vrcp.f32 %v1606_v24  ;;  %v2019_v24 = vld [vmem:[#allocation9 + $0x70] sm:$0xff] }
 0x686   :  { %v2913_v35 = vpop.eup %2912 }
 0x687   :  { %v1615_v36 = vmul.f32 %v2913_v35, %v2909_v31  ;;  %v2915_v41 = vpop.eup %2914  ;;  %v2016_v31 = vld [vmem:[#allocation9 + $0x58] sm:$0xff]  ;;  %v2017_v35 = vld [vmem:[#allocation9 + $0x60] sm:$0xff] }
 0x688   :  { %v1614_v43 = vmul.f32 %v2915_v41, %v3491_v42  ;;  %v2753_v12 = vpack.c.bf16 %v2016_v31, %v2015_v30 }
 0x689   :  { %v2917_v32 = vpop.eup %2916 }
 0x68a   :  { %v3533_v44 = vadd.f32 %v1615_v36, %v1614_v43  ;;  %v2018_v36 = vld [vmem:[#allocation9 + $0x68] sm:$0xff]  ;;  %v2020_v43 = vld [vmem:[#allocation9 + $0x78] sm:$0xff] }
 0x68b   :  { %v2756_v41 = vpack.c.bf16 %v2018_v36, %v2017_v35 }
 0x68c   :  { %2918 = vtanh.f32 %v3533_v44 }
 0x696   :  { %v2919_v45 = vpop.eup %2918 }
 0x697   :  { %v1618_v46 = vmul.f32 %v2919_v45, %v2917_v32  ;;  %v1813_v32 = vld [vmem:[#allocation2 + $0x7] ss:$8 sm:$0xf] }
 0x698   :  { %v1960_v45 = vrot.slane %v1813_v32, %v3304_v20 }
 0x699   :  { %1686 = vmatmul.mubr.f32.vlgmr.msra.gmra.mrb[16].mxu0 %v1618_v46  ;;  %1757 = vmatmul.mubr.f32.vlgmr.msra.gmra.mrb[16].mxu1 %v1618_v46 }
 0x69a   :  { %2676 = vmatpush1.bf16.msra.mxu0 %v3172_v48  ;;  %2708 = vmatpush1.bf16.msra.mxu1 %v3174_v49  ;;  %v1620_v48 = vld [vmem:[#allocation2 + $0x6] ss:$8 sm:$0xf] }
 0x69b   :  { %2678 = vmatprep.subr.bf16.mxu0 %v3178_v52  ;;  %2710 = vmatprep.subr.bf16.mxu1 %v3180_v53  ;;  %v1767_v49 = vrot.slane %v1620_v48, %v3304_v20 }
 0x69c   :  { %1878 = vmatprep.mubr.f32.mxu0 %v3081_v8  ;;  %1949 = vmatprep.mubr.f32.mxu1 %v3081_v8 }
 0x69e   :  { %2680 = vmatpush1.bf16.msra.mxu0 %v3184_v60  ;;  %2712 = vmatpush1.bf16.msra.mxu1 %v3186_v61  ;;  %v1771_v60 = vrot.slane %v1620_v48, %v3311_v27 }
 0x69f   :  { %2682 = vmatprep.subr.bf16.mxu0 %v3190_v0  ;;  %2714 = vmatprep.subr.bf16.mxu1 %v3192_v1 }
 0x6a2   :  { %2684 = vmatpush1.bf16.msra.mxu0 %v3198_v9  ;;  %2716 = vmatpush1.bf16.msra.mxu1 %v3200_v10 }
 0x6a3   :  { %2686 = vmatprep.subr.bf16.mxu0 %v3204_v13  ;;  %2718 = vmatprep.subr.bf16.mxu1 %v3206_v14  ;;  %v1775_v14 = vrot.slane %v1620_v48, %v3306_v23 }
 0x6a6   :  { %2688 = vmatpush1.bf16.msra.mxu0 %v3210_v21  ;;  %2720 = vmatpush1.bf16.msra.mxu1 %v3212_v22  ;;  %v1779_v22 = vrot.slane %v1620_v48, %v3313_v28 }
 0x6a7   :  { %2690 = vmatprep.subr.bf16.mxu0 %v3216_v25  ;;  %2722 = vmatprep.subr.bf16.mxu1 %v3218_v26 }
 0x6aa   :  { %2692 = vmatpush1.bf16.msra.mxu0 %v3222_v33  ;;  %2724 = vmatpush1.bf16.msra.mxu1 %v3224_v34 }
 0x6ab   :  { %2694 = vmatprep.subr.bf16.mxu0 %v3228_v37  ;;  %2726 = vmatprep.subr.bf16.mxu1 %v3230_v38 }
 0x6ae   :  { %2696 = vmatpush1.bf16.msra.mxu0 %v3234_v47  ;;  %2728 = vmatpush1.bf16.msra.mxu1 %v3236_v50 }
 0x6af   :  { %2698 = vmatprep.subr.bf16.mxu0 %v3240_v55  ;;  %2730 = vmatprep.subr.bf16.mxu1 %v3242_v56 }
 0x6b2   :  { %2700 = vmatpush1.bf16.msra.mxu0 %v3246_v3  ;;  %2732 = vmatpush1.bf16.msra.mxu1 %v3248_v4 }
 0x6b3   :  { %2702 = vmatprep.subr.bf16.mxu0 %v3252_v6  ;;  %2734 = vmatprep.subr.bf16.mxu1 %v3254_v7 }
 0x6b6   :  { %2704 = vmatpush1.bf16.msra.mxu0 %v3258_v16  ;;  %2736 = vmatpush1.bf16.msra.mxu1 %v3260_v17 }
 0x6b7   :  { %2737 = vmatprep.subr.bf16.mxu0 %v3082_v58 }
 0x76c   :  { %v1687_v52 = vpop.f32.mrb[16].mxu0  ;;  %v1758_v53 = vpop.f32.mrb[16].mxu1 }
 0x76d   :  { %v1784_v61 = vadd.f32 %v1767_v49, %v1687_v52  ;;  %v1689_v0 = vpop.f32.mrb[17].mxu0  ;;  %v1760_v1 = vpop.f32.mrb[17].mxu1  ;;  %v1786_v21 = vadd.f32 %v1775_v14, %v1758_v53  ;;  %v1964_v49 = vrot.slane %v1813_v32, %v3311_v27 }
 0x76e   :  { %v1785_v9 = vadd.f32 %v1771_v60, %v1689_v0  ;;  %v1787_v25 = vadd.f32 %v1779_v22, %v1760_v1  ;;  %v1968_v1 = vrot.slane %v1813_v32, %v3306_v23 }
 0x76f   :  { %v2166_v10 = vmul.f32 -1.442695, %v1784_v61  ;;  %v2168_v26 = vmul.f32 -1.442695, %v1786_v21 }
 0x770   :  { %v2167_v13 = vmul.f32 -1.442695, %v1785_v9 }
 0x771   :  { %2920 = vpow2.f32 %v2166_v10  ;;  %v1972_v10 = vrot.slane %v1813_v32, %v3313_v28 }
 0x772   :  { %2922 = vpow2.f32 %v2167_v13 }
 0x773   :  { %2924 = vtanh.f32 %v1787_v25 }
 0x774   :  { %2926 = vpow2.f32 %v2168_v26 }
 0x77b   :  { %v2921_v33 = vpop.eup %2920 }
 0x77c   :  { %v1797_v34 = vadd.f32 1.0, %v2921_v33  ;;  %v2923_v37 = vpop.eup %2922 }
 0x77d   :  { %v1798_v38 = vadd.f32 1.0, %v2923_v37  ;;  %v2925_v47 = vpop.eup %2924 }
 0x77e   :  { %2928 = vrcp.f32 %v1797_v34  ;;  %v2927_v50 = vpop.eup %2926 }
 0x77f   :  { %2930 = vrcp.f32 %v1798_v38  ;;  %v1799_v4 = vadd.f32 1.0, %v2927_v50 }
 0x781   :  { %2932 = vrcp.f32 %v1799_v4 }
 0x788   :  { %v2929_v55 = vpop.eup %2928 }
 0x789   :  { %v1808_v56 = vmul.f32 %v2929_v55, %v2925_v47  ;;  %v2931_v3 = vpop.eup %2930 }
 0x78a   :  { %v1807_v6 = vmul.f32 %v2931_v3, %v3533_v44  ;;  %v2759_v44 = vpack.c.bf16 %v2020_v43, %v2019_v24 }
 0x78b   :  { %v2933_v16 = vpop.eup %2932 }
 0x78c   :  { %v3573_v7 = vadd.f32 %v1808_v56, %v1807_v6  ;;  %v2172_v56 = vld [vmem:[%s3602_s5] ss:$0 sm:$0xff] }
 0x78e   :  { %2934 = vtanh.f32 %v3573_v7 }
 0x798   :  { %v2935_v17 = vpop.eup %2934 }
 0x799   :  { %v1811_v42 = vmul.f32 %v2935_v17, %v2933_v16 }
 0x79b   :  { %1879 = vmatmul.mubr.f32.vlgmr.msra.gmra.mrb[18].mxu0 %v1811_v42  ;;  %1950 = vmatmul.mubr.f32.vlgmr.msra.gmra.mrb[18].mxu1 %v1811_v42 }
 0x79c   :  { %2739 = vmatpush3.bf16.msra.mxu0 %v2738_v57  ;;  %2222 = vmatprep.mubr.msk.f32.mxu0 %vm3083_vm0, %v3081_v8 }
 0x79d   :  { %2740 = vmatprep.subr.bf16.mxu0 %v3082_v58 }
 0x7a0   :  { %2742 = vmatpush3.bf16.msra.mxu0 %v2741_v2 }
 0x7a1   :  { %2743 = vmatprep.subr.bf16.mxu0 %v3082_v58 }
 0x7a4   :  { %2745 = vmatpush3.bf16.msra.mxu0 %v2744_v39 }
 0x7a5   :  { %2746 = vmatprep.subr.bf16.mxu0 %v3082_v58 }
 0x7a8   :  { %2748 = vmatpush3.bf16.msra.mxu0 %v2747_v18 }
 0x7a9   :  { %2749 = vmatprep.subr.bf16.mxu0 %v3082_v58 }
 0x7ac   :  { %2751 = vmatpush3.bf16.msra.mxu0 %v2750_v29 }
 0x7ad   :  { %2752 = vmatprep.subr.bf16.mxu0 %v3082_v58 }
 0x7b0   :  { %2754 = vmatpush3.bf16.msra.mxu0 %v2753_v12 }
 0x7b1   :  { %2755 = vmatprep.subr.bf16.mxu0 %v3082_v58 }
 0x7b4   :  { %2757 = vmatpush3.bf16.msra.mxu0 %v2756_v41 }
 0x7b5   :  { %2758 = vmatprep.subr.bf16.mxu0 %v3082_v58 }
 0x7b8   :  { %2760 = vmatpush3.bf16.msra.mxu0 %v2759_v44 }
 0x86e   :  { %v1880_v46 = vpop.f32.mrb[18].mxu0  ;;  %v1951_v48 = vpop.f32.mrb[18].mxu1 }
 0x86f   :  { %v1977_v52 = vadd.f32 %v1960_v45, %v1880_v46  ;;  %v1882_v53 = vpop.f32.mrb[19].mxu0  ;;  %v1953_v60 = vpop.f32.mrb[19].mxu1  ;;  %v1979_v9 = vadd.f32 %v1968_v1, %v1951_v48 }
 0x870   :  { %v1978_v8 = vadd.f32 %v1964_v49, %v1882_v53  ;;  %v1980_v13 = vadd.f32 %v1972_v10, %v1953_v60 }
 0x871   :  { %v2169_v61 = vmul.f32 -1.442695, %v1977_v52  ;;  %v2171_v14 = vmul.f32 -1.442695, %v1979_v9 }
 0x872   :  { %v2170_v0 = vmul.f32 -1.442695, %v1978_v8 }
 0x873   :  { %2936 = vpow2.f32 %v2169_v61 }
 0x874   :  { %2938 = vpow2.f32 %v2170_v0 }
 0x875   :  { %2940 = vtanh.f32 %v1980_v13 }
 0x876   :  { %2942 = vpow2.f32 %v2171_v14 }
 0x87d   :  { %v2937_v20 = vpop.eup %2936 }
 0x87e   :  { %v1990_v21 = vadd.f32 1.0, %v2937_v20  ;;  %v2939_v22 = vpop.eup %2938 }
 0x87f   :  { %v1991_v27 = vadd.f32 1.0, %v2939_v22  ;;  %v2941_v25 = vpop.eup %2940 }
 0x880   :  { %2944 = vrcp.f32 %v1990_v21  ;;  %v2943_v26 = vpop.eup %2942 }
 0x881   :  { %2946 = vrcp.f32 %v1991_v27  ;;  %v1992_v23 = vadd.f32 1.0, %v2943_v26 }
 0x883   :  { %2948 = vrcp.f32 %v1992_v23 }
 0x88a   :  { %v2945_v33 = vpop.eup %2944 }
 0x88b   :  { %v2001_v34 = vmul.f32 %v2945_v33, %v2941_v25  ;;  %v2947_v37 = vpop.eup %2946 }
 0x88c   :  { %v2000_v38 = vmul.f32 %v2947_v37, %v3573_v7 }
 0x88d   :  { %v2949_v28 = vpop.eup %2948 }
 0x88e   :  { %v2002_v47 = vadd.f32 %v2001_v34, %v2000_v38 }
 0x890   :  { %2950 = vtanh.f32 %v2002_v47 }
 0x89a   :  { %v2951_v50 = vpop.eup %2950 }
 0x89b   :  { %v2004_v55 = vmul.f32 %v2951_v50, %v2949_v28 }
 0x89d   :  { %2223 = vmatmul.mubr.f32.vlgmr.msra.gmra.mrb[20].mxu0 %v2004_v55 }
 0x970   :  { %v2094_v3 = vpop.f32.mrb[20].mxu0 }
 0x971   :  { %v2095_v4 = vadd.f32 %v2172_v56, %v2094_v3  ;;  %v2224_v6 = vpop.f32.mrb[21].mxu0 }
 0x973   :  { %2098 = vst [vmem:[#allocation11] sm:$0xff] %v2095_v4 }
 0x974   :  { %3051 = shalt.err (!%p3048_p8)
}
 0x975   :  { %s3052_s30 = scalar_lea.hbm %s3603_s6, 128 }
 0x976   :  { %p3053_p9 = scmp.ne.s32.totalorder %s3603_s6, %s3052_s30  ;;  %p3056_p10 = scmp.lt.u32.totalorder %s3052_s30, %s3603_s6 }
 0x978   :  { %p3058_p11 = pnand %p3056_p10, %p3053_p9 }
 0x97a   :  { %3061 = shalt.err (!%p3058_p11)
}
 0x97b   :  { %2108 = dma.vmem_to_hbm [thread:$0]  %s2106_s26, 128, %s3603_s6, [#allocation5]  }
 0x97c   :  { %3068 = dma.done.wait [#allocation5], 128  }
 0x97d   :  { %3069 = vsyncadd [#allocation5], 4294967168 }
 0x97e   :  { %2112 = vsyncpa [#allocation4], 1 }
 0x97f   :  { %2113 = vsyncpa [#allocation7], 1 }
 0x980   :  { %2114 = vsyncpa [#allocation10], 1 }
 0x981   :  { %2115 = vsyncpa [#allocation5], 1 }

</bundles_post_ra>
